<compile_context>
chip_gen: v7x
topology: tpu7x:2x2x1
jax: 0.10.0
libtpu: 0.0.40
codegen_flags: <defaults>
</compile_context>

<pallas_src>
import math

import jax
import jax.numpy as jnp
from jax.experimental import pallas as pl
from jax.experimental.pallas import tpu as pltpu

BN_EPS = 1e-5
LANE = 128
SUBLANE = 8
ROW_TILE = 1024                          # max row tile for the no-BN path
FULL_BATCH_VMEM_LIMIT = 64 * 1024 * 1024  # fits v7x physical VMEM (64 MiB)


def _round_up(x, m):
    return ((x + m - 1) // m) * m


def _pick_row_tile(n):
    """Adaptive row tile: as large as possible (<= ROW_TILE) without padding
    n by more than ~12.5%, so awkward N never pays a near-full wasted tile."""
    n8 = _round_up(n, SUBLANE)
    if n8 <= ROW_TILE:
        return n8
    for t in (1024, 512, 256, 128):
        if t <= ROW_TILE and 8 * (_round_up(n8, t) - n8) <= n8:
            return t
    return 128


# ----------------------------- Pallas kernel ------------------------------- #

def make_fused_mlp_kernel(layer_ops):
    """Build a fused kernel for a chain of linear layers.

    layer_ops: tuple of (use_bn, use_relu) applied BEFORE each linear, in the
    order norm -> relu -> linear (relu_first=False semantics of the PyTorch
    MLP).  Kernel ref layout: x_ref, then per layer ([gamma, beta] if use_bn,
    w, b), then out_ref.  Weights are bf16 (MXU), accumulation and all
    BatchNorm math is f32.
    """
    def kernel(x_ref, *refs):
        out_ref = refs[-1]
        params = refs[:-1]
        h = x_ref[...].astype(jnp.float32)
        idx = 0
        for (use_bn, use_relu) in layer_ops:
            if use_bn:
                gamma = params[idx][...]
                beta = params[idx + 1][...]
                idx += 2
                # BatchNorm1d(track_running_stats=False): exact batch stats,
                # biased variance; E[h^2] - E[h]^2 keeps fewer live (N, 128)
                # temporaries in VMEM than E[(h - mean)^2].
                mean = jnp.mean(h, axis=0, keepdims=True)
                var = jnp.maximum(
                    jnp.mean(h * h, axis=0, keepdims=True) - mean * mean, 0.0)
                h = (h - mean) * jax.lax.rsqrt(var + BN_EPS) * gamma + beta
            if use_relu:
                h = jnp.maximum(h, 0.0)
            w = params[idx][...]        # bf16, resident in VMEM
            b = params[idx + 1][...]    # f32
            idx += 2
            h = jnp.dot(h.astype(jnp.bfloat16), w,
                        preferred_element_type=jnp.float32) + b
        out_ref[...] = h.astype(out_ref.dtype)

    return kernel


# ------------------------------ call wrapper -------------------------------- #

def fused_mlp_call(x, layer_ops, flat_params, out_dim, *, row_tiled):
    """Run a fused chain of linear layers as ONE pallas_call.

    x:           (N, d_in) f32 (d_in may be narrow; full-extent last dim).
    flat_params: padded parameter arrays matching `layer_ops`.
    row_tiled:   True  -> grid over rows, weights resident, megacore-parallel
                          (only valid when no layer uses BatchNorm).
                 False -> full batch in one VMEM block (exact BatchNorm stats).
    """
    assert not (row_tiled and any(bn for bn, _ in layer_ops)), \
        "BatchNorm layers need global batch statistics -> full-batch block."
    n, d_in = x.shape
    kernel = make_fused_mlp_kernel(tuple(layer_ops))

    if row_tiled:
        tile = _pick_row_tile(n)
        n_pad = _round_up(n, tile)
        if n_pad != n:
            x = jnp.pad(x, ((0, n_pad - n), (0, 0)))
        in_specs = [pl.BlockSpec((tile, d_in), lambda i: (i, 0))]
        for p in flat_params:
            # Weights / biases: full array, constant block index -> fetched
            # once and resident in VMEM across all row tiles.  (pl.Buffered(1)
            # would drop their second pipeline buffer, but the bf16 weights
            # total <1 MB, so it is not worth the extra constraint.)
            in_specs.append(pl.BlockSpec(p.shape, lambda i: (0, 0)))
        out = pl.pallas_call(
            kernel,
            out_shape=jax.ShapeDtypeStruct((n_pad, out_dim), jnp.float32),
            grid=(n_pad // tile,),
            in_specs=in_specs,
            # Narrow (out_dim) final store trades masked vst for 16x less HBM
            # writeback and no wrapper column slice.
            out_specs=pl.BlockSpec((tile, out_dim), lambda i: (i, 0)),
            compiler_params=pltpu.CompilerParams(
                dimension_semantics=("parallel",)),
        )(x, *flat_params)
        return out[:n] if n_pad != n else out

    # Full-batch single block: BatchNorm statistics are exact batch statistics.
    out = pl.pallas_call(
        kernel,
        out_shape=jax.ShapeDtypeStruct((n, out_dim), jnp.float32),
        in_specs=[pl.BlockSpec(memory_space=pltpu.MemorySpace.VMEM)
                  for _ in range(1 + len(flat_params))],
        out_specs=pl.BlockSpec(memory_space=pltpu.MemorySpace.VMEM),
        compiler_params=pltpu.CompilerParams(
            vmem_limit_bytes=FULL_BATCH_VMEM_LIMIT),
    )(x, *flat_params)
    return out


# --------------------------- parameters (glue) ------------------------------ #

def pad_linear(w, b, pad_in, pad_out):
    """Torch-layout (d_out, d_in) weight -> (in[, padded], out[, padded]);
    weight cast to bf16 for the MXU, bias kept f32."""
    d_out, d_in = w.shape
    in_p = _round_up(d_in, LANE) if pad_in else d_in
    out_p = _round_up(d_out, LANE) if pad_out else d_out
    w_p = jnp.zeros((in_p, out_p), jnp.float32).at[:d_in, :d_out].set(w.T)
    b_p = jnp.zeros((1, out_p), jnp.float32).at[0, :d_out].set(b)
    return w_p.astype(jnp.bfloat16), b_p


def pad_bn(gamma, beta):
    """gamma padded with 1, beta with 0 -> padded lanes stay exactly 0."""
    d = gamma.shape[0]
    d_pad = _round_up(d, LANE)
    g_p = jnp.ones((1, d_pad), jnp.float32).at[0, :d].set(gamma)
    b_p = jnp.zeros((1, d_pad), jnp.float32).at[0, :d].set(beta)
    return g_p, b_p


def init_mlp_params(key, channel_list, batch_norm):
    """Raw (unpadded, torch-layout) params matching nn.Linear / BatchNorm1d."""
    lins, norms = [], []
    for d_in, d_out in zip(channel_list[:-1], channel_list[1:]):
        key, kw, kb = jax.random.split(key, 3)
        bound = 1.0 / math.sqrt(d_in)  # torch Linear.reset_parameters bound
        w = jax.random.uniform(kw, (d_out, d_in), jnp.float32, -bound, bound)
        b = jax.random.uniform(kb, (d_out,), jnp.float32, -bound, bound)
        lins.append((w, b))
    if batch_norm:
        for d in channel_list[1:-1]:
            norms.append((jnp.ones((d,), jnp.float32),
                          jnp.zeros((d,), jnp.float32)))
    return {"lins": lins, "norms": norms, "batch_norm": batch_norm,
            "channels": list(channel_list)}, key


def build_network(mlps):
    """Flatten encoder / hidden / decoder MLPs into one linear-layer chain.

    Only the network's very first weight keeps its real in-dim and only the
    very last weight keeps its real out-dim; all internal feature dims are
    zero-padded to 128 lanes (exact through linear / BN / ReLU).
    """
    ops, flat = [], []
    n_layers = sum(len(m["lins"]) for m in mlps)
    li = 0
    for m in mlps:
        lins, norms, bn = m["lins"], m["norms"], m["batch_norm"]
        for j, (w, b) in enumerate(lins):
            if j == 0:
                ops.append((False, False))       # MLP's first lin: no norm/relu
            elif bn:
                gamma, beta = norms[j - 1]
                ops.append((True, True))          # norm -> relu -> lin
                flat += list(pad_bn(gamma, beta))
            else:
                ops.append((False, True))         # relu -> lin
            w_p, b_p = pad_linear(w, b,
                                  pad_in=(li != 0),
                                  pad_out=(li != n_layers - 1))
            flat += [w_p, b_p]
            li += 1
    d_in = mlps[0]["channels"][0]
    d_out = mlps[-1]["channels"][-1]
    return {"ops": ops, "flat": flat, "d_in": d_in, "d_out": d_out}


# ------------------------------- forward ------------------------------------ #

def nn_forward(x, net):
    """NN.forward: z = decoder(nn(encoder(x))) as one fused pallas_call."""
    x = x.astype(jnp.float32)
    assert x.shape[1] == net["d_in"]
    has_bn = any(bn for bn, _ in net["ops"])
    if has_bn:
        # Exact batch statistics need the whole batch in one block; encoder and
        # decoder are folded in so no activation round-trips HBM.
        # TODO(synk): tiled two-pass BatchNorm fallback for N beyond the VMEM
        # ceiling of the full-batch block.
        return fused_mlp_call(x, net["ops"], net["flat"], net["d_out"],
                              row_tiled=False)
    # No BatchNorm anywhere: the whole network is one row-tiled call.
    return fused_mlp_call(x, net["ops"], net["flat"], net["d_out"],
                          row_tiled=True)


# ---------------------------------- main ------------------------------------ #

if __name__ == "__main__":
    hparams = {
        "encoder": [8, 32, 32, 8],   # encoder channel list; dim_enc = 8
        "decoder": [8, 32, 32, 8],   # decoder channel list
        "nb_hidden_layers": 3,
        "size_hidden_layers": 32,
        "bn_bool": True,
    }
    dim_enc = hparams["encoder"][-1]
    hidden_channels = ([dim_enc]
                       + [hparams["size_hidden_layers"]] * hparams["nb_hidden_layers"]
                       + [dim_enc])

    key = jax.random.PRNGKey(0)
    # Encoder / decoder are plain MLPs (no batch norm); the core `self.nn`
    # MLP uses batch_norm=bn_bool — same assumption as the reference simulator.
    enc_params, key = init_mlp_params(key, hparams["encoder"], batch_norm=False)
    hid_params, key = init_mlp_params(key, hidden_channels,
                                      batch_norm=hparams["bn_bool"])
    dec_params, key = init_mlp_params(key, hparams["decoder"], batch_norm=False)

    # data.x : (num_nodes, num_features)
    key, kx = jax.random.split(key)
    x = jax.random.normal(kx, (16, hparams["encoder"][0]), jnp.float32)

    # bn_bool=True path: one full-batch fused call (exact BatchNorm stats).
    net_bn = build_network([enc_params, hid_params, dec_params])
    fwd_bn = jax.jit(lambda xx: nn_forward(xx, net_bn))
    out_bn = jax.block_until_ready(fwd_bn(x))
    assert out_bn.shape == (16, hparams["decoder"][-1])
    assert bool(jnp.all(jnp.isfinite(out_bn)))

    # bn_bool=False path: one row-tiled, megacore-parallel fused call.
    hid_nobn, _ = init_mlp_params(jax.random.PRNGKey(1), hidden_channels,
                                  batch_norm=False)
    net_nobn = build_network([enc_params, hid_nobn, dec_params])
    fwd_nobn = jax.jit(lambda xx: nn_forward(xx, net_nobn))
    out_nobn = jax.block_until_ready(fwd_nobn(x))
    assert out_nobn.shape == (16, hparams["decoder"][-1])
    assert bool(jnp.all(jnp.isfinite(out_nobn)))

    print("KERNEL_OK")
</pallas_src>

<mosaic_0001>
module attributes {stable_mosaic.version = 11 : i64} {
  func.func @kernel(%arg0: memref<16x8xf32, #tpu.memory_space<vmem>>, %arg1: memref<8x128xbf16, #tpu.memory_space<vmem>>, %arg2: memref<1x128xf32, #tpu.memory_space<vmem>>, %arg3: memref<128x128xbf16, #tpu.memory_space<vmem>>, %arg4: memref<1x128xf32, #tpu.memory_space<vmem>>, %arg5: memref<128x128xbf16, #tpu.memory_space<vmem>>, %arg6: memref<1x128xf32, #tpu.memory_space<vmem>>, %arg7: memref<128x128xbf16, #tpu.memory_space<vmem>>, %arg8: memref<1x128xf32, #tpu.memory_space<vmem>>, %arg9: memref<1x128xf32, #tpu.memory_space<vmem>>, %arg10: memref<1x128xf32, #tpu.memory_space<vmem>>, %arg11: memref<128x128xbf16, #tpu.memory_space<vmem>>, %arg12: memref<1x128xf32, #tpu.memory_space<vmem>>, %arg13: memref<1x128xf32, #tpu.memory_space<vmem>>, %arg14: memref<1x128xf32, #tpu.memory_space<vmem>>, %arg15: memref<128x128xbf16, #tpu.memory_space<vmem>>, %arg16: memref<1x128xf32, #tpu.memory_space<vmem>>, %arg17: memref<1x128xf32, #tpu.memory_space<vmem>>, %arg18: memref<1x128xf32, #tpu.memory_space<vmem>>, %arg19: memref<128x128xbf16, #tpu.memory_space<vmem>>, %arg20: memref<1x128xf32, #tpu.memory_space<vmem>>, %arg21: memref<128x128xbf16, #tpu.memory_space<vmem>>, %arg22: memref<1x128xf32, #tpu.memory_space<vmem>>, %arg23: memref<128x128xbf16, #tpu.memory_space<vmem>>, %arg24: memref<1x128xf32, #tpu.memory_space<vmem>>, %arg25: memref<128x8xbf16, #tpu.memory_space<vmem>>, %arg26: memref<1x8xf32, #tpu.memory_space<vmem>>, %arg27: memref<16x8xf32, #tpu.memory_space<vmem>>) attributes {dimension_semantics = [], scalar_prefetch = 0 : i64, scratch_operands = 0 : i64, tpu.core_type = #tpu.core_type<tc>} {
    %c0 = arith.constant 0 : index
    %c0_0 = arith.constant 0 : index
    %0 = vector.load %arg0[%c0, %c0_0] : memref<16x8xf32, #tpu.memory_space<vmem>>, vector<16x8xf32>
    %c0_1 = arith.constant 0 : index
    %c0_2 = arith.constant 0 : index
    %1 = vector.load %arg1[%c0_1, %c0_2] : memref<8x128xbf16, #tpu.memory_space<vmem>>, vector<8x128xbf16>
    %c0_3 = arith.constant 0 : index
    %c0_4 = arith.constant 0 : index
    %2 = vector.load %arg2[%c0_3, %c0_4] : memref<1x128xf32, #tpu.memory_space<vmem>>, vector<1x128xf32>
    %3 = arith.truncf %0 : vector<16x8xf32> to vector<16x8xbf16>
    %cst = arith.constant dense<0.000000e+00> : vector<16x128xf32>
    %4 = tpu.matmul %3, %1, %cst {dimension_numbers = #tpu.dot_dimension_numbers<[1], [0], [0], [1], [0, 0, 1, 1], [], []>} : vector<16x8xbf16>, vector<8x128xbf16>, vector<16x128xf32> -> vector<16x128xf32>
    %5 = vector.broadcast %2 : vector<1x128xf32> to vector<16x128xf32>
    %6 = arith.addf %4, %5 : vector<16x128xf32>
    %cst_5 = arith.constant 0.000000e+00 : f32
    %7 = vector.broadcast %cst_5 : f32 to vector<16x128xf32>
    %8 = arith.maximumf %6, %7 : vector<16x128xf32>
    %c0_6 = arith.constant 0 : index
    %c0_7 = arith.constant 0 : index
    %9 = vector.load %arg3[%c0_6, %c0_7] : memref<128x128xbf16, #tpu.memory_space<vmem>>, vector<128x128xbf16>
    %c0_8 = arith.constant 0 : index
    %c0_9 = arith.constant 0 : index
    %10 = vector.load %arg4[%c0_8, %c0_9] : memref<1x128xf32, #tpu.memory_space<vmem>>, vector<1x128xf32>
    %11 = arith.truncf %8 : vector<16x128xf32> to vector<16x128xbf16>
    %cst_10 = arith.constant dense<0.000000e+00> : vector<16x128xf32>
    %12 = tpu.matmul %11, %9, %cst_10 {dimension_numbers = #tpu.dot_dimension_numbers<[1], [0], [0], [1], [0, 0, 1, 1], [], []>} : vector<16x128xbf16>, vector<128x128xbf16>, vector<16x128xf32> -> vector<16x128xf32>
    %13 = vector.broadcast %10 : vector<1x128xf32> to vector<16x128xf32>
    %14 = arith.addf %12, %13 : vector<16x128xf32>
    %cst_11 = arith.constant 0.000000e+00 : f32
    %15 = vector.broadcast %cst_11 : f32 to vector<16x128xf32>
    %16 = arith.maximumf %14, %15 : vector<16x128xf32>
    %c0_12 = arith.constant 0 : index
    %c0_13 = arith.constant 0 : index
    %17 = vector.load %arg5[%c0_12, %c0_13] : memref<128x128xbf16, #tpu.memory_space<vmem>>, vector<128x128xbf16>
    %c0_14 = arith.constant 0 : index
    %c0_15 = arith.constant 0 : index
    %18 = vector.load %arg6[%c0_14, %c0_15] : memref<1x128xf32, #tpu.memory_space<vmem>>, vector<1x128xf32>
    %19 = arith.truncf %16 : vector<16x128xf32> to vector<16x128xbf16>
    %cst_16 = arith.constant dense<0.000000e+00> : vector<16x128xf32>
    %20 = tpu.matmul %19, %17, %cst_16 {dimension_numbers = #tpu.dot_dimension_numbers<[1], [0], [0], [1], [0, 0, 1, 1], [], []>} : vector<16x128xbf16>, vector<128x128xbf16>, vector<16x128xf32> -> vector<16x128xf32>
    %21 = vector.broadcast %18 : vector<1x128xf32> to vector<16x128xf32>
    %22 = arith.addf %20, %21 : vector<16x128xf32>
    %c0_17 = arith.constant 0 : index
    %c0_18 = arith.constant 0 : index
    %23 = vector.load %arg7[%c0_17, %c0_18] : memref<128x128xbf16, #tpu.memory_space<vmem>>, vector<128x128xbf16>
    %c0_19 = arith.constant 0 : index
    %c0_20 = arith.constant 0 : index
    %24 = vector.load %arg8[%c0_19, %c0_20] : memref<1x128xf32, #tpu.memory_space<vmem>>, vector<1x128xf32>
    %25 = arith.truncf %22 : vector<16x128xf32> to vector<16x128xbf16>
    %cst_21 = arith.constant dense<0.000000e+00> : vector<16x128xf32>
    %26 = tpu.matmul %25, %23, %cst_21 {dimension_numbers = #tpu.dot_dimension_numbers<[1], [0], [0], [1], [0, 0, 1, 1], [], []>} : vector<16x128xbf16>, vector<128x128xbf16>, vector<16x128xf32> -> vector<16x128xf32>
    %27 = vector.broadcast %24 : vector<1x128xf32> to vector<16x128xf32>
    %28 = arith.addf %26, %27 : vector<16x128xf32>
    %c0_22 = arith.constant 0 : index
    %c0_23 = arith.constant 0 : index
    %29 = vector.load %arg9[%c0_22, %c0_23] : memref<1x128xf32, #tpu.memory_space<vmem>>, vector<1x128xf32>
    %c0_24 = arith.constant 0 : index
    %c0_25 = arith.constant 0 : index
    %30 = vector.load %arg10[%c0_24, %c0_25] : memref<1x128xf32, #tpu.memory_space<vmem>>, vector<1x128xf32>
    %cst_26 = arith.constant dense<0.000000e+00> : vector<128xf32>
    %31 = vector.multi_reduction <add>, %28, %cst_26 [0] : vector<16x128xf32> to vector<128xf32>
    %32 = vector.shape_cast %31 : vector<128xf32> to vector<1x128xf32>
    %cst_27 = arith.constant 1.600000e+01 : f32
    %33 = vector.broadcast %cst_27 : f32 to vector<1x128xf32>
    %34 = arith.divf %32, %33 : vector<1x128xf32>
    %35 = arith.mulf %28, %28 : vector<16x128xf32>
    %cst_28 = arith.constant dense<0.000000e+00> : vector<128xf32>
    %36 = vector.multi_reduction <add>, %35, %cst_28 [0] : vector<16x128xf32> to vector<128xf32>
    %37 = vector.shape_cast %36 : vector<128xf32> to vector<1x128xf32>
    %cst_29 = arith.constant 1.600000e+01 : f32
    %38 = vector.broadcast %cst_29 : f32 to vector<1x128xf32>
    %39 = arith.divf %37, %38 : vector<1x128xf32>
    %40 = arith.mulf %34, %34 : vector<1x128xf32>
    %41 = arith.subf %39, %40 : vector<1x128xf32>
    %cst_30 = arith.constant 0.000000e+00 : f32
    %42 = vector.broadcast %cst_30 : f32 to vector<1x128xf32>
    %43 = arith.maximumf %41, %42 : vector<1x128xf32>
    %44 = vector.broadcast %34 : vector<1x128xf32> to vector<16x128xf32>
    %45 = arith.subf %28, %44 : vector<16x128xf32>
    %cst_31 = arith.constant 9.99999974E-6 : f32
    %46 = vector.broadcast %cst_31 : f32 to vector<1x128xf32>
    %47 = arith.addf %43, %46 : vector<1x128xf32>
    %48 = math.rsqrt %47 : vector<1x128xf32>
    %49 = vector.broadcast %48 : vector<1x128xf32> to vector<16x128xf32>
    %50 = arith.mulf %45, %49 : vector<16x128xf32>
    %51 = vector.broadcast %29 : vector<1x128xf32> to vector<16x128xf32>
    %52 = arith.mulf %50, %51 : vector<16x128xf32>
    %53 = vector.broadcast %30 : vector<1x128xf32> to vector<16x128xf32>
    %54 = arith.addf %52, %53 : vector<16x128xf32>
    %cst_32 = arith.constant 0.000000e+00 : f32
    %55 = vector.broadcast %cst_32 : f32 to vector<16x128xf32>
    %56 = arith.maximumf %54, %55 : vector<16x128xf32>
    %c0_33 = arith.constant 0 : index
    %c0_34 = arith.constant 0 : index
    %57 = vector.load %arg11[%c0_33, %c0_34] : memref<128x128xbf16, #tpu.memory_space<vmem>>, vector<128x128xbf16>
    %c0_35 = arith.constant 0 : index
    %c0_36 = arith.constant 0 : index
    %58 = vector.load %arg12[%c0_35, %c0_36] : memref<1x128xf32, #tpu.memory_space<vmem>>, vector<1x128xf32>
    %59 = arith.truncf %56 : vector<16x128xf32> to vector<16x128xbf16>
    %cst_37 = arith.constant dense<0.000000e+00> : vector<16x128xf32>
    %60 = tpu.matmul %59, %57, %cst_37 {dimension_numbers = #tpu.dot_dimension_numbers<[1], [0], [0], [1], [0, 0, 1, 1], [], []>} : vector<16x128xbf16>, vector<128x128xbf16>, vector<16x128xf32> -> vector<16x128xf32>
    %61 = vector.broadcast %58 : vector<1x128xf32> to vector<16x128xf32>
    %62 = arith.addf %60, %61 : vector<16x128xf32>
    %c0_38 = arith.constant 0 : index
    %c0_39 = arith.constant 0 : index
    %63 = vector.load %arg13[%c0_38, %c0_39] : memref<1x128xf32, #tpu.memory_space<vmem>>, vector<1x128xf32>
    %c0_40 = arith.constant 0 : index
    %c0_41 = arith.constant 0 : index
    %64 = vector.load %arg14[%c0_40, %c0_41] : memref<1x128xf32, #tpu.memory_space<vmem>>, vector<1x128xf32>
    %cst_42 = arith.constant dense<0.000000e+00> : vector<128xf32>
    %65 = vector.multi_reduction <add>, %62, %cst_42 [0] : vector<16x128xf32> to vector<128xf32>
    %66 = vector.shape_cast %65 : vector<128xf32> to vector<1x128xf32>
    %cst_43 = arith.constant 1.600000e+01 : f32
    %67 = vector.broadcast %cst_43 : f32 to vector<1x128xf32>
    %68 = arith.divf %66, %67 : vector<1x128xf32>
    %69 = arith.mulf %62, %62 : vector<16x128xf32>
    %cst_44 = arith.constant dense<0.000000e+00> : vector<128xf32>
    %70 = vector.multi_reduction <add>, %69, %cst_44 [0] : vector<16x128xf32> to vector<128xf32>
    %71 = vector.shape_cast %70 : vector<128xf32> to vector<1x128xf32>
    %cst_45 = arith.constant 1.600000e+01 : f32
    %72 = vector.broadcast %cst_45 : f32 to vector<1x128xf32>
    %73 = arith.divf %71, %72 : vector<1x128xf32>
    %74 = arith.mulf %68, %68 : vector<1x128xf32>
    %75 = arith.subf %73, %74 : vector<1x128xf32>
    %cst_46 = arith.constant 0.000000e+00 : f32
    %76 = vector.broadcast %cst_46 : f32 to vector<1x128xf32>
    %77 = arith.maximumf %75, %76 : vector<1x128xf32>
    %78 = vector.broadcast %68 : vector<1x128xf32> to vector<16x128xf32>
    %79 = arith.subf %62, %78 : vector<16x128xf32>
    %cst_47 = arith.constant 9.99999974E-6 : f32
    %80 = vector.broadcast %cst_47 : f32 to vector<1x128xf32>
    %81 = arith.addf %77, %80 : vector<1x128xf32>
    %82 = math.rsqrt %81 : vector<1x128xf32>
    %83 = vector.broadcast %82 : vector<1x128xf32> to vector<16x128xf32>
    %84 = arith.mulf %79, %83 : vector<16x128xf32>
    %85 = vector.broadcast %63 : vector<1x128xf32> to vector<16x128xf32>
    %86 = arith.mulf %84, %85 : vector<16x128xf32>
    %87 = vector.broadcast %64 : vector<1x128xf32> to vector<16x128xf32>
    %88 = arith.addf %86, %87 : vector<16x128xf32>
    %cst_48 = arith.constant 0.000000e+00 : f32
    %89 = vector.broadcast %cst_48 : f32 to vector<16x128xf32>
    %90 = arith.maximumf %88, %89 : vector<16x128xf32>
    %c0_49 = arith.constant 0 : index
    %c0_50 = arith.constant 0 : index
    %91 = vector.load %arg15[%c0_49, %c0_50] : memref<128x128xbf16, #tpu.memory_space<vmem>>, vector<128x128xbf16>
    %c0_51 = arith.constant 0 : index
    %c0_52 = arith.constant 0 : index
    %92 = vector.load %arg16[%c0_51, %c0_52] : memref<1x128xf32, #tpu.memory_space<vmem>>, vector<1x128xf32>
    %93 = arith.truncf %90 : vector<16x128xf32> to vector<16x128xbf16>
    %cst_53 = arith.constant dense<0.000000e+00> : vector<16x128xf32>
    %94 = tpu.matmul %93, %91, %cst_53 {dimension_numbers = #tpu.dot_dimension_numbers<[1], [0], [0], [1], [0, 0, 1, 1], [], []>} : vector<16x128xbf16>, vector<128x128xbf16>, vector<16x128xf32> -> vector<16x128xf32>
    %95 = vector.broadcast %92 : vector<1x128xf32> to vector<16x128xf32>
    %96 = arith.addf %94, %95 : vector<16x128xf32>
    %c0_54 = arith.constant 0 : index
    %c0_55 = arith.constant 0 : index
    %97 = vector.load %arg17[%c0_54, %c0_55] : memref<1x128xf32, #tpu.memory_space<vmem>>, vector<1x128xf32>
    %c0_56 = arith.constant 0 : index
    %c0_57 = arith.constant 0 : index
    %98 = vector.load %arg18[%c0_56, %c0_57] : memref<1x128xf32, #tpu.memory_space<vmem>>, vector<1x128xf32>
    %cst_58 = arith.constant dense<0.000000e+00> : vector<128xf32>
    %99 = vector.multi_reduction <add>, %96, %cst_58 [0] : vector<16x128xf32> to vector<128xf32>
    %100 = vector.shape_cast %99 : vector<128xf32> to vector<1x128xf32>
    %cst_59 = arith.constant 1.600000e+01 : f32
    %101 = vector.broadcast %cst_59 : f32 to vector<1x128xf32>
    %102 = arith.divf %100, %101 : vector<1x128xf32>
    %103 = arith.mulf %96, %96 : vector<16x128xf32>
    %cst_60 = arith.constant dense<0.000000e+00> : vector<128xf32>
    %104 = vector.multi_reduction <add>, %103, %cst_60 [0] : vector<16x128xf32> to vector<128xf32>
    %105 = vector.shape_cast %104 : vector<128xf32> to vector<1x128xf32>
    %cst_61 = arith.constant 1.600000e+01 : f32
    %106 = vector.broadcast %cst_61 : f32 to vector<1x128xf32>
    %107 = arith.divf %105, %106 : vector<1x128xf32>
    %108 = arith.mulf %102, %102 : vector<1x128xf32>
    %109 = arith.subf %107, %108 : vector<1x128xf32>
    %cst_62 = arith.constant 0.000000e+00 : f32
    %110 = vector.broadcast %cst_62 : f32 to vector<1x128xf32>
    %111 = arith.maximumf %109, %110 : vector<1x128xf32>
    %112 = vector.broadcast %102 : vector<1x128xf32> to vector<16x128xf32>
    %113 = arith.subf %96, %112 : vector<16x128xf32>
    %cst_63 = arith.constant 9.99999974E-6 : f32
    %114 = vector.broadcast %cst_63 : f32 to vector<1x128xf32>
    %115 = arith.addf %111, %114 : vector<1x128xf32>
    %116 = math.rsqrt %115 : vector<1x128xf32>
    %117 = vector.broadcast %116 : vector<1x128xf32> to vector<16x128xf32>
    %118 = arith.mulf %113, %117 : vector<16x128xf32>
    %119 = vector.broadcast %97 : vector<1x128xf32> to vector<16x128xf32>
    %120 = arith.mulf %118, %119 : vector<16x128xf32>
    %121 = vector.broadcast %98 : vector<1x128xf32> to vector<16x128xf32>
    %122 = arith.addf %120, %121 : vector<16x128xf32>
    %cst_64 = arith.constant 0.000000e+00 : f32
    %123 = vector.broadcast %cst_64 : f32 to vector<16x128xf32>
    %124 = arith.maximumf %122, %123 : vector<16x128xf32>
    %c0_65 = arith.constant 0 : index
    %c0_66 = arith.constant 0 : index
    %125 = vector.load %arg19[%c0_65, %c0_66] : memref<128x128xbf16, #tpu.memory_space<vmem>>, vector<128x128xbf16>
    %c0_67 = arith.constant 0 : index
    %c0_68 = arith.constant 0 : index
    %126 = vector.load %arg20[%c0_67, %c0_68] : memref<1x128xf32, #tpu.memory_space<vmem>>, vector<1x128xf32>
    %127 = arith.truncf %124 : vector<16x128xf32> to vector<16x128xbf16>
    %cst_69 = arith.constant dense<0.000000e+00> : vector<16x128xf32>
    %128 = tpu.matmul %127, %125, %cst_69 {dimension_numbers = #tpu.dot_dimension_numbers<[1], [0], [0], [1], [0, 0, 1, 1], [], []>} : vector<16x128xbf16>, vector<128x128xbf16>, vector<16x128xf32> -> vector<16x128xf32>
    %129 = vector.broadcast %126 : vector<1x128xf32> to vector<16x128xf32>
    %130 = arith.addf %128, %129 : vector<16x128xf32>
    %c0_70 = arith.constant 0 : index
    %c0_71 = arith.constant 0 : index
    %131 = vector.load %arg21[%c0_70, %c0_71] : memref<128x128xbf16, #tpu.memory_space<vmem>>, vector<128x128xbf16>
    %c0_72 = arith.constant 0 : index
    %c0_73 = arith.constant 0 : index
    %132 = vector.load %arg22[%c0_72, %c0_73] : memref<1x128xf32, #tpu.memory_space<vmem>>, vector<1x128xf32>
    %133 = arith.truncf %130 : vector<16x128xf32> to vector<16x128xbf16>
    %cst_74 = arith.constant dense<0.000000e+00> : vector<16x128xf32>
    %134 = tpu.matmul %133, %131, %cst_74 {dimension_numbers = #tpu.dot_dimension_numbers<[1], [0], [0], [1], [0, 0, 1, 1], [], []>} : vector<16x128xbf16>, vector<128x128xbf16>, vector<16x128xf32> -> vector<16x128xf32>
    %135 = vector.broadcast %132 : vector<1x128xf32> to vector<16x128xf32>
    %136 = arith.addf %134, %135 : vector<16x128xf32>
    %cst_75 = arith.constant 0.000000e+00 : f32
    %137 = vector.broadcast %cst_75 : f32 to vector<16x128xf32>
    %138 = arith.maximumf %136, %137 : vector<16x128xf32>
    %c0_76 = arith.constant 0 : index
    %c0_77 = arith.constant 0 : index
    %139 = vector.load %arg23[%c0_76, %c0_77] : memref<128x128xbf16, #tpu.memory_space<vmem>>, vector<128x128xbf16>
    %c0_78 = arith.constant 0 : index
    %c0_79 = arith.constant 0 : index
    %140 = vector.load %arg24[%c0_78, %c0_79] : memref<1x128xf32, #tpu.memory_space<vmem>>, vector<1x128xf32>
    %141 = arith.truncf %138 : vector<16x128xf32> to vector<16x128xbf16>
    %cst_80 = arith.constant dense<0.000000e+00> : vector<16x128xf32>
    %142 = tpu.matmul %141, %139, %cst_80 {dimension_numbers = #tpu.dot_dimension_numbers<[1], [0], [0], [1], [0, 0, 1, 1], [], []>} : vector<16x128xbf16>, vector<128x128xbf16>, vector<16x128xf32> -> vector<16x128xf32>
    %143 = vector.broadcast %140 : vector<1x128xf32> to vector<16x128xf32>
    %144 = arith.addf %142, %143 : vector<16x128xf32>
    %cst_81 = arith.constant 0.000000e+00 : f32
    %145 = vector.broadcast %cst_81 : f32 to vector<16x128xf32>
    %146 = arith.maximumf %144, %145 : vector<16x128xf32>
    %c0_82 = arith.constant 0 : index
    %c0_83 = arith.constant 0 : index
    %147 = vector.load %arg25[%c0_82, %c0_83] : memref<128x8xbf16, #tpu.memory_space<vmem>>, vector<128x8xbf16>
    %c0_84 = arith.constant 0 : index
    %c0_85 = arith.constant 0 : index
    %148 = vector.load %arg26[%c0_84, %c0_85] : memref<1x8xf32, #tpu.memory_space<vmem>>, vector<1x8xf32>
    %149 = arith.truncf %146 : vector<16x128xf32> to vector<16x128xbf16>
    %cst_86 = arith.constant dense<0.000000e+00> : vector<16x8xf32>
    %150 = tpu.matmul %149, %147, %cst_86 {dimension_numbers = #tpu.dot_dimension_numbers<[1], [0], [0], [1], [0, 0, 1, 1], [], []>} : vector<16x128xbf16>, vector<128x8xbf16>, vector<16x8xf32> -> vector<16x8xf32>
    %151 = vector.broadcast %148 : vector<1x8xf32> to vector<16x8xf32>
    %152 = arith.addf %150, %151 : vector<16x8xf32>
    %c0_87 = arith.constant 0 : index
    %c0_88 = arith.constant 0 : index
    %153 = vector.load %arg27[%c0_87, %c0_88] : memref<16x8xf32, #tpu.memory_space<vmem>>, vector<16x8xf32>
    tpu.vector_store %arg27[%c0_87, %c0_88], %152 {strides = array<i32>} : memref<16x8xf32, #tpu.memory_space<vmem>>, vector<16x8xf32>,
    return
  }
}

</mosaic_0001>

<bundles_post_ra>
// kernel: _lambda_.1
= control target key start
LH: loop header
LB: loop body
LE: loop exit
PB: predicated region body
PF: predicated region fallthrough
CT: control target
= control target key end

     0   :  { %s3482_s0 = inlined_call_operand.hbm [shape: f32[16,8], index: 0, kind: input, shape index: {}]   ;;  %s3483_s1 = inlined_call_operand.hbm [shape: bf16[8,128], index: 1, kind: input, shape index: {}]   ;;  %s3484_s2 = inlined_call_operand.hbm [shape: f32[1,128], index: 2, kind: input, shape index: {}]   ;;  %s3485_s3 = inlined_call_operand.hbm [shape: bf16[128,128], index: 3, kind: input, shape index: {}]   ;;  %s3486_s4 = inlined_call_operand.hbm [shape: f32[1,128], index: 4, kind: input, shape index: {}]   ;;  %s3487_s5 = inlined_call_operand.hbm [shape: bf16[128,128], index: 5, kind: input, shape index: {}]   ;;  %s3488_s6 = inlined_call_operand.hbm [shape: f32[1,128], index: 6, kind: input, shape index: {}]   ;;  %s3489_s7 = inlined_call_operand.hbm [shape: bf16[128,128], index: 7, kind: input, shape index: {}]   ;;  %s3490_s8 = inlined_call_operand.hbm [shape: f32[1,128], index: 8, kind: input, shape index: {}]   ;;  %s3491_s9 = inlined_call_operand.hbm [shape: f32[1,128], index: 9, kind: input, shape index: {}, may-alias: {9,13,17}]   ;;  %s3492_s10 = inlined_call_operand.hbm [shape: f32[1,128], index: 10, kind: input, shape index: {}, may-alias: {10,14,18}]   ;;  %s3493_s11 = inlined_call_operand.hbm [shape: bf16[128,128], index: 11, kind: input, shape index: {}]   ;;  %s3494_s12 = inlined_call_operand.hbm [shape: f32[1,128], index: 12, kind: input, shape index: {}]   ;;  %s3495_s13 = inlined_call_operand.hbm [shape: f32[1,128], index: 13, kind: input, shape index: {}, may-alias: {9,13,17}]   ;;  %s3496_s14 = inlined_call_operand.hbm [shape: f32[1,128], index: 14, kind: input, shape index: {}, may-alias: {10,14,18}]   ;;  %s3497_s15 = inlined_call_operand.hbm [shape: bf16[128,128], index: 15, kind: input, shape index: {}]   ;;  %s3498_s16 = inlined_call_operand.hbm [shape: f32[1,128], index: 16, kind: input, shape index: {}]   ;;  %s3499_s17 = inlined_call_operand.hbm [shape: f32[1,128], index: 17, kind: input, shape index: {}, may-alias: {9,13,17}]   ;;  %s3500_s18 = inlined_call_operand.hbm [shape: f32[1,128], index: 18, kind: input, shape index: {}, may-alias: {10,14,18}]   ;;  %s3501_s19 = inlined_call_operand.hbm [shape: bf16[128,128], index: 19, kind: input, shape index: {}]   ;;  %s3502_s20 = inlined_call_operand.hbm [shape: f32[1,128], index: 20, kind: input, shape index: {}]   ;;  %s3503_s21 = inlined_call_operand.hbm [shape: bf16[128,128], index: 21, kind: input, shape index: {}]   ;;  %s3504_s22 = inlined_call_operand.hbm [shape: f32[1,128], index: 22, kind: input, shape index: {}]   ;;  %s3505_s23 = inlined_call_operand.hbm [shape: bf16[128,128], index: 23, kind: input, shape index: {}]   ;;  %s3506_s24 = inlined_call_operand.hbm [shape: f32[1,128], index: 24, kind: input, shape index: {}]   ;;  %s3507_s25 = inlined_call_operand.hbm [shape: bf16[128,8], index: 25, kind: input, shape index: {}]   ;;  %s3508_s26 = inlined_call_operand.hbm [shape: f32[1,8], index: 26, kind: input, shape index: {}]   ;;  %s3509_s27 = inlined_call_operand.hbm [shape: f32[16,8], index: 27, kind: output, shape index: {}]  }
   0x1   :  { %3525 = sst [smem:[#allocation60_spill]] %s3482_s0 }
   0x2   :  { %3526 = sst [smem:[#allocation61_spill]] %s3483_s1 }
   0x3   :  { %3527 = sst [smem:[#allocation62_spill]] %s3484_s2 }
   0x4   :  { %3528 = sst [smem:[#allocation63_spill]] %s3485_s3 }
   0x5   :  { %3529 = sst [smem:[#allocation64_spill]] %s3486_s4 }
   0x6   :  { %3530 = sst [smem:[#allocation65_spill]] %s3487_s5 }
   0x7   :  { %3531 = sst [smem:[#allocation66_spill]] %s3488_s6 }
   0x8   :  { %3532 = sst [smem:[#allocation67_spill]] %s3489_s7 }
   0x9   :  { %3533 = sst [smem:[#allocation68_spill]] %s3490_s8 }
   0xa   :  { %3534 = sst [smem:[#allocation69_spill]] %s3491_s9 }
   0xb   :  { %3535 = sst [smem:[#allocation70_spill]] %s3492_s10 }
   0xc   :  { %3536 = sst [smem:[#allocation71_spill]] %s3493_s11 }
   0xd   :  { %3537 = sst [smem:[#allocation72_spill]] %s3506_s24 }
   0xe   :  { %3538 = sst [smem:[#allocation73_spill]] %s3508_s26 }
   0xf   :  { %3539 = sst [smem:[#allocation74_spill]] %s3509_s27 }
  0x10   :  { %32 = vsyncpa [#allocation3], 0 }
  0x11   :  { %33 = vsyncpa [#allocation6], 0 }
  0x12   :  { %34 = vsyncpa [#allocation9], 0 }
  0x13   :  { %35 = vsyncpa [#allocation12], 0 }
  0x14   :  { %36 = vsyncpa [#allocation15], 0 }
  0x15   :  { %37 = vsyncpa [#allocation18], 0 }
  0x16   :  { %38 = vsyncpa [#allocation21], 0 }
  0x17   :  { %39 = vsyncpa [#allocation24], 0 }
  0x18   :  { %40 = vsyncpa [#allocation27], 0 }
  0x19   :  { %41 = vsyncpa [#allocation30], 0 }
  0x1a   :  { %42 = vsyncpa [#allocation33], 0 }
  0x1b   :  { %43 = vsyncpa [#allocation36], 0 }
  0x1c   :  { %44 = vsyncpa [#allocation39], 0 }
  0x1d   :  { %45 = vsyncpa [#allocation42], 0 }
  0x1e   :  { %46 = vsyncpa [#allocation4], 0  ;;  %s2794_s7 = smov [#allocation5]   ;;  %s2795_s8 = smov [#allocation8]  }
  0x1f   :  { %s65_s4 = sshll.u32 %s2794_s7, 4  ;;  %s84_s30 = sshll.u32 %s2795_s8, 4  ;;  %s66_s4 = int_to_ptr.vmem [resolvable:$true] %s65_s4  ;;  %s2968_s30 = int_to_ptr.vmem [resolvable:$true] %s84_s30 }
  0x20   :  { %s3540_s28 = sld [smem:[#allocation61_spill]] }
  0x26   :  { %s2148_s0 = scalar_lea.hbm %s3540_s28, 64 }
  0x27   :  { %p2149_p0 = scmp.ne.s32.totalorder %s3540_s28, %s2148_s0  ;;  %p2152_p1 = scmp.lt.u32.totalorder %s2148_s0, %s3540_s28 }
  0x29   :  { %p2154_p2 = pnand %p2152_p1, %p2149_p0 }
  0x2b   :  { %2157 = shalt.err (!%p2154_p2)
}
  0x2c   :  { %s2158_s11 = scalar_lea.vmem %s66_s4, 64  ;;  %p2163_p4 = scmp.lt.s32.totalorder %s66_s4, %s66_s4 }
  0x2d   :  { %p2159_p3 = scmp.ne.s32.totalorder %s66_s4, %s2158_s11  ;;  %p2164_p5 = scmp.lt.s32.totalorder %s2158_s11, %s2158_s11 }
  0x2f   :  { %p2165_p6 = por %p2164_p5, %p2163_p4 }
  0x31   :  { %p2166_p7 = pnand %p2165_p6, %p2159_p3 }
  0x33   :  { %2169 = shalt.err (!%p2166_p7)
}
  0x34   :  { %68 = dma.hbm_to_vmem [thread:$0]  %s3540_s28, 64, %s66_s4, [#allocation6]  }
  0x35   :  { %s3541_s9 = sld [smem:[#allocation63_spill]] }
  0x3b   :  { %s2170_s5 = scalar_lea.hbm %s3541_s9, 1024 }
  0x3c   :  { %p2171_p8 = scmp.ne.s32.totalorder %s3541_s9, %s2170_s5  ;;  %p2174_p9 = scmp.lt.u32.totalorder %s2170_s5, %s3541_s9 }
  0x3e   :  { %p2176_p10 = pnand %p2174_p9, %p2171_p8 }
  0x40   :  { %2179 = shalt.err (!%p2176_p10)
}
  0x41   :  { %s2180_s6 = scalar_lea.vmem %s2968_s30, 1024  ;;  %p2185_p12 = scmp.lt.s32.totalorder %s2968_s30, %s2968_s30 }
  0x42   :  { %p2181_p11 = scmp.ne.s32.totalorder %s2968_s30, %s2180_s6  ;;  %p2186_p13 = scmp.lt.s32.totalorder %s2180_s6, %s2180_s6 }
  0x44   :  { %p2187_p0 = por %p2186_p13, %p2185_p12 }
  0x46   :  { %p2188_p1 = pnand %p2187_p0, %p2181_p11 }
  0x48   :  { %2191 = shalt.err (!%p2188_p1)
}
  0x49   :  { %s2796_s4 = smov 64   ;;  %s2797_s28 = smov 4  }
  0x4a   :  { %90 = dma.hbm_to_vmem [thread:$0]  %s3541_s9, 1024, %s2968_s30, [#allocation9], %s2796_s4, %s2796_s4, %s2797_s28  }
  0x4b   :  { %s2798_s3 = smov [#allocation11]   ;;  %s2799_s8 = smov [#allocation14]  }
  0x4c   :  { %s106_s7 = sshll.u32 %s2798_s3, 4  ;;  %s128_s5 = sshll.u32 %s2799_s8, 4  ;;  %s107_s7 = int_to_ptr.vmem [resolvable:$true] %s106_s7  ;;  %s3002_s5 = int_to_ptr.vmem [resolvable:$true] %s128_s5 }
  0x4d   :  { %s3542_s0 = sld [smem:[#allocation65_spill]] }
  0x53   :  { %s2192_s1 = scalar_lea.hbm %s3542_s0, 1024 }
  0x54   :  { %p2193_p2 = scmp.ne.s32.totalorder %s3542_s0, %s2192_s1  ;;  %p2196_p3 = scmp.lt.u32.totalorder %s2192_s1, %s3542_s0 }
  0x56   :  { %p2198_p4 = pnand %p2196_p3, %p2193_p2 }
  0x58   :  { %2201 = shalt.err (!%p2198_p4)
}
  0x59   :  { %s2202_s30 = scalar_lea.vmem %s107_s7, 1024  ;;  %p2207_p6 = scmp.lt.s32.totalorder %s107_s7, %s107_s7 }
  0x5a   :  { %p2203_p5 = scmp.ne.s32.totalorder %s107_s7, %s2202_s30  ;;  %p2208_p7 = scmp.lt.s32.totalorder %s2202_s30, %s2202_s30 }
  0x5c   :  { %p2209_p8 = por %p2208_p7, %p2207_p6 }
  0x5e   :  { %p2210_p9 = pnand %p2209_p8, %p2203_p5 }
  0x60   :  { %2213 = shalt.err (!%p2210_p9)
}
  0x61   :  { %112 = dma.hbm_to_vmem [thread:$0]  %s3542_s0, 1024, %s107_s7, [#allocation12], %s2796_s4, %s2796_s4, %s2797_s28  }
  0x62   :  { %s3543_s24 = sld [smem:[#allocation67_spill]] }
  0x68   :  { %s2214_s26 = scalar_lea.hbm %s3543_s24, 1024 }
  0x69   :  { %p2215_p10 = scmp.ne.s32.totalorder %s3543_s24, %s2214_s26  ;;  %p2218_p11 = scmp.lt.u32.totalorder %s2214_s26, %s3543_s24 }
  0x6b   :  { %p2220_p12 = pnand %p2218_p11, %p2215_p10 }
  0x6d   :  { %2223 = shalt.err (!%p2220_p12)
}
  0x6e   :  { %s2224_s1 = scalar_lea.vmem %s3002_s5, 1024  ;;  %p2229_p0 = scmp.lt.s32.totalorder %s3002_s5, %s3002_s5 }
  0x6f   :  { %p2225_p13 = scmp.ne.s32.totalorder %s3002_s5, %s2224_s1  ;;  %p2230_p1 = scmp.lt.s32.totalorder %s2224_s1, %s2224_s1 }
  0x71   :  { %p2231_p2 = por %p2230_p1, %p2229_p0 }
  0x73   :  { %p2232_p3 = pnand %p2231_p2, %p2225_p13 }
  0x75   :  { %2235 = shalt.err (!%p2232_p3)
}
  0x76   :  { %134 = dma.hbm_to_vmem [thread:$0]  %s3543_s24, 1024, %s3002_s5, [#allocation15], %s2796_s4, %s2796_s4, %s2797_s28  }
  0x77   :  { %s2800_s6 = smov [#allocation17]   ;;  %s2801_s9 = smov [#allocation20]  }
  0x78   :  { %s151_s30 = sshll.u32 %s2800_s6, 4  ;;  %s170_s11 = sshll.u32 %s2801_s9, 4  ;;  %s152_s30 = int_to_ptr.vmem [resolvable:$true] %s151_s30  ;;  %s3039_s11 = int_to_ptr.vmem [resolvable:$true] %s170_s11 }
  0x79   :  { %s3544_s26 = sld [smem:[#allocation69_spill]] }
  0x7f   :  { %s2236_s3 = scalar_lea.hbm %s3544_s26, 16 }
  0x80   :  { %p2237_p4 = scmp.ne.s32.totalorder %s3544_s26, %s2236_s3  ;;  %p2240_p5 = scmp.lt.u32.totalorder %s2236_s3, %s3544_s26 }
  0x82   :  { %p2242_p6 = pnand %p2240_p5, %p2237_p4 }
  0x84   :  { %2245 = shalt.err (!%p2242_p6)
}
  0x85   :  { %s2246_s5 = scalar_lea.vmem %s152_s30, 16  ;;  %s2250_s24 = scalar_lea.vmem %s152_s30, 32 }
  0x86   :  { %p2247_p7 = scmp.ne.s32.totalorder %s152_s30, %s2246_s5  ;;  %p2251_p8 = scmp.lt.s32.totalorder %s152_s30, %s152_s30 }
  0x87   :  { %p2252_p9 = scmp.lt.s32.totalorder %s2250_s24, %s2246_s5 }
  0x89   :  { %p2253_p10 = por %p2252_p9, %p2251_p8 }
  0x8b   :  { %p2254_p11 = pnand %p2253_p10, %p2247_p7 }
  0x8d   :  { %2257 = shalt.err (!%p2254_p11)
}
  0x8e   :  { %154 = dma.hbm_to_vmem [thread:$0]  %s3544_s26, 16, %s152_s30, [#allocation18]  }
  0x8f   :  { %s3545_s27 = sld [smem:[#allocation71_spill]] }
  0x95   :  { %s2258_s2 = scalar_lea.hbm %s3545_s27, 1024 }
  0x96   :  { %p2259_p12 = scmp.ne.s32.totalorder %s3545_s27, %s2258_s2  ;;  %p2262_p13 = scmp.lt.u32.totalorder %s2258_s2, %s3545_s27 }
  0x98   :  { %p2264_p0 = pnand %p2262_p13, %p2259_p12 }
  0x9a   :  { %2267 = shalt.err (!%p2264_p0)
}
  0x9b   :  { %s2268_s1 = scalar_lea.vmem %s3039_s11, 1024  ;;  %p2273_p2 = scmp.lt.s32.totalorder %s3039_s11, %s3039_s11 }
  0x9c   :  { %p2269_p1 = scmp.ne.s32.totalorder %s3039_s11, %s2268_s1  ;;  %p2274_p3 = scmp.lt.s32.totalorder %s2268_s1, %s2268_s1 }
  0x9e   :  { %p2275_p4 = por %p2274_p3, %p2273_p2 }
  0xa0   :  { %p2276_p5 = pnand %p2275_p4, %p2269_p1 }
  0xa2   :  { %2279 = shalt.err (!%p2276_p5)
}
  0xa3   :  { %176 = dma.hbm_to_vmem [thread:$0]  %s3545_s27, 1024, %s3039_s11, [#allocation21], %s2796_s4, %s2796_s4, %s2797_s28  }
  0xa4   :  { %s2802_s5 = smov [#allocation23]   ;;  %s2803_s7 = smov [#allocation26]  }
  0xa5   :  { %s193_s24 = sshll.u32 %s2802_s5, 4  ;;  %s212_s0 = sshll.u32 %s2803_s7, 4  ;;  %s194_s24 = int_to_ptr.vmem [resolvable:$true] %s193_s24  ;;  %s3073_s0 = int_to_ptr.vmem [resolvable:$true] %s212_s0 }
  0xa6   :  { %s2280_s2 = scalar_lea.hbm %s3495_s13, 16 }
  0xa7   :  { %p2281_p6 = scmp.ne.s32.totalorder %s3495_s13, %s2280_s2  ;;  %p2284_p7 = scmp.lt.u32.totalorder %s2280_s2, %s3495_s13 }
  0xa9   :  { %p2286_p8 = pnand %p2284_p7, %p2281_p6 }
  0xab   :  { %2289 = shalt.err (!%p2286_p8)
}
  0xac   :  { %s2290_s11 = scalar_lea.vmem %s194_s24, 16  ;;  %s2294_s27 = scalar_lea.vmem %s194_s24, 32 }
  0xad   :  { %p2291_p9 = scmp.ne.s32.totalorder %s194_s24, %s2290_s11  ;;  %p2295_p10 = scmp.lt.s32.totalorder %s194_s24, %s194_s24 }
  0xae   :  { %p2296_p11 = scmp.lt.s32.totalorder %s2294_s27, %s2290_s11 }
  0xb0   :  { %p2297_p12 = por %p2296_p11, %p2295_p10 }
  0xb2   :  { %p2298_p13 = pnand %p2297_p12, %p2291_p9 }
  0xb4   :  { %2301 = shalt.err (!%p2298_p13)
}
  0xb5   :  { %196 = dma.hbm_to_vmem [thread:$0]  %s3495_s13, 16, %s194_s24, [#allocation24]  }
  0xb6   :  { %s2302_s7 = scalar_lea.hbm %s3497_s15, 1024 }
  0xb7   :  { %p2303_p0 = scmp.ne.s32.totalorder %s3497_s15, %s2302_s7  ;;  %p2306_p1 = scmp.lt.u32.totalorder %s2302_s7, %s3497_s15 }
  0xb9   :  { %p2308_p2 = pnand %p2306_p1, %p2303_p0 }
  0xbb   :  { %2311 = shalt.err (!%p2308_p2)
}
  0xbc   :  { %s2312_s3 = scalar_lea.vmem %s3073_s0, 1024  ;;  %p2317_p4 = scmp.lt.s32.totalorder %s3073_s0, %s3073_s0 }
  0xbd   :  { %p2313_p3 = scmp.ne.s32.totalorder %s3073_s0, %s2312_s3  ;;  %p2318_p5 = scmp.lt.s32.totalorder %s2312_s3, %s2312_s3 }
  0xbf   :  { %p2319_p6 = por %p2318_p5, %p2317_p4 }
  0xc1   :  { %p2320_p7 = pnand %p2319_p6, %p2313_p3 }
  0xc3   :  { %2323 = shalt.err (!%p2320_p7)
}
  0xc4   :  { %218 = dma.hbm_to_vmem [thread:$0]  %s3497_s15, 1024, %s3073_s0, [#allocation27], %s2796_s4, %s2796_s4, %s2797_s28  }
  0xc5   :  { %s2804_s10 = smov [#allocation29]   ;;  %s2805_s11 = smov [#allocation32]  }
  0xc6   :  { %s235_s29 = sshll.u32 %s2804_s10, 4  ;;  %s254_s27 = sshll.u32 %s2805_s11, 4  ;;  %s236_s29 = int_to_ptr.vmem [resolvable:$true] %s235_s29  ;;  %s3107_s27 = int_to_ptr.vmem [resolvable:$true] %s254_s27 }
  0xc7   :  { %s2324_s26 = scalar_lea.hbm %s3499_s17, 16 }
  0xc8   :  { %p2325_p8 = scmp.ne.s32.totalorder %s3499_s17, %s2324_s26  ;;  %p2328_p9 = scmp.lt.u32.totalorder %s2324_s26, %s3499_s17 }
  0xca   :  { %p2330_p10 = pnand %p2328_p9, %p2325_p8 }
  0xcc   :  { %2333 = shalt.err (!%p2330_p10)
}
  0xcd   :  { %s2334_s15 = scalar_lea.vmem %s236_s29, 16  ;;  %s2338_s0 = scalar_lea.vmem %s236_s29, 32 }
  0xce   :  { %p2335_p11 = scmp.ne.s32.totalorder %s236_s29, %s2334_s15  ;;  %p2339_p12 = scmp.lt.s32.totalorder %s236_s29, %s236_s29 }
  0xcf   :  { %p2340_p13 = scmp.lt.s32.totalorder %s2338_s0, %s2334_s15 }
  0xd1   :  { %p2341_p0 = por %p2340_p13, %p2339_p12 }
  0xd3   :  { %p2342_p1 = pnand %p2341_p0, %p2335_p11 }
  0xd5   :  { %2345 = shalt.err (!%p2342_p1)
}
  0xd6   :  { %238 = dma.hbm_to_vmem [thread:$0]  %s3499_s17, 16, %s236_s29, [#allocation30]  }
  0xd7   :  { %s2346_s24 = scalar_lea.hbm %s3501_s19, 1024 }
  0xd8   :  { %p2347_p2 = scmp.ne.s32.totalorder %s3501_s19, %s2346_s24  ;;  %p2350_p3 = scmp.lt.u32.totalorder %s2346_s24, %s3501_s19 }
  0xda   :  { %p2352_p4 = pnand %p2350_p3, %p2347_p2 }
  0xdc   :  { %2355 = shalt.err (!%p2352_p4)
}
  0xdd   :  { %s2356_s26 = scalar_lea.vmem %s3107_s27, 1024  ;;  %p2361_p6 = scmp.lt.s32.totalorder %s3107_s27, %s3107_s27 }
  0xde   :  { %p2357_p5 = scmp.ne.s32.totalorder %s3107_s27, %s2356_s26  ;;  %p2362_p7 = scmp.lt.s32.totalorder %s2356_s26, %s2356_s26 }
  0xe0   :  { %p2363_p8 = por %p2362_p7, %p2361_p6 }
  0xe2   :  { %p2364_p9 = pnand %p2363_p8, %p2357_p5 }
  0xe4   :  { %2367 = shalt.err (!%p2364_p9)
}
  0xe5   :  { %260 = dma.hbm_to_vmem [thread:$0]  %s3501_s19, 1024, %s3107_s27, [#allocation33], %s2796_s4, %s2796_s4, %s2797_s28  }
  0xe6   :  { %s2806_s5 = smov [#allocation35]   ;;  %s2807_s6 = smov [#allocation38]  }
  0xe7   :  { %s276_s7 = sshll.u32 %s2806_s5, 4  ;;  %s298_s9 = sshll.u32 %s2807_s6, 4  ;;  %s277_s7 = int_to_ptr.vmem [resolvable:$true] %s276_s7  ;;  %s3141_s9 = int_to_ptr.vmem [resolvable:$true] %s298_s9 }
  0xe8   :  { %s2368_s2 = scalar_lea.hbm %s3503_s21, 1024 }
  0xe9   :  { %p2369_p10 = scmp.ne.s32.totalorder %s3503_s21, %s2368_s2  ;;  %p2372_p11 = scmp.lt.u32.totalorder %s2368_s2, %s3503_s21 }
  0xeb   :  { %p2374_p12 = pnand %p2372_p11, %p2369_p10 }
  0xed   :  { %2377 = shalt.err (!%p2374_p12)
}
  0xee   :  { %s2378_s19 = scalar_lea.vmem %s277_s7, 1024  ;;  %p2383_p0 = scmp.lt.s32.totalorder %s277_s7, %s277_s7 }
  0xef   :  { %p2379_p13 = scmp.ne.s32.totalorder %s277_s7, %s2378_s19  ;;  %p2384_p1 = scmp.lt.s32.totalorder %s2378_s19, %s2378_s19 }
  0xf1   :  { %p2385_p2 = por %p2384_p1, %p2383_p0 }
  0xf3   :  { %p2386_p3 = pnand %p2385_p2, %p2379_p13 }
  0xf5   :  { %2389 = shalt.err (!%p2386_p3)
}
  0xf6   :  { %282 = dma.hbm_to_vmem [thread:$0]  %s3503_s21, 1024, %s277_s7, [#allocation36], %s2796_s4, %s2796_s4, %s2797_s28  }
  0xf7   :  { %s2390_s30 = scalar_lea.hbm %s3505_s23, 1024 }
  0xf8   :  { %p2391_p4 = scmp.ne.s32.totalorder %s3505_s23, %s2390_s30  ;;  %p2394_p5 = scmp.lt.u32.totalorder %s2390_s30, %s3505_s23 }
  0xfa   :  { %p2396_p6 = pnand %p2394_p5, %p2391_p4 }
  0xfc   :  { %2399 = shalt.err (!%p2396_p6)
}
  0xfd   :  { %s2400_s6 = scalar_lea.vmem %s3141_s9, 1024  ;;  %p2405_p8 = scmp.lt.s32.totalorder %s3141_s9, %s3141_s9 }
  0xfe   :  { %p2401_p7 = scmp.ne.s32.totalorder %s3141_s9, %s2400_s6  ;;  %p2406_p9 = scmp.lt.s32.totalorder %s2400_s6, %s2400_s6 }
 0x100   :  { %p2407_p10 = por %p2406_p9, %p2405_p8 }
 0x102   :  { %p2408_p11 = pnand %p2407_p10, %p2401_p7 }
 0x104   :  { %2411 = shalt.err (!%p2408_p11)
}
 0x105   :  { %304 = dma.hbm_to_vmem [thread:$0]  %s3505_s23, 1024, %s3141_s9, [#allocation39], %s2796_s4, %s2796_s4, %s2797_s28  }
 0x106   :  { %s2808_s15 = smov [#allocation41]   ;;  %s2809_s2 = smov [#allocation2]  }
 0x107   :  { %s320_s0 = sshll.u32 %s2808_s15, 4  ;;  %s52_s8 = sshll.u32 %s2809_s2, 4  ;;  %s321_s0 = int_to_ptr.vmem [resolvable:$true] %s320_s0  ;;  %s3178_s8 = int_to_ptr.vmem [resolvable:$true] %s52_s8 }
 0x108   :  { %s2412_s24 = scalar_lea.hbm %s3507_s25, 1024 }
 0x109   :  { %p2413_p12 = scmp.ne.s32.totalorder %s3507_s25, %s2412_s24  ;;  %p2416_p13 = scmp.lt.u32.totalorder %s2412_s24, %s3507_s25 }
 0x10b   :  { %p2418_p0 = pnand %p2416_p13, %p2413_p12 }
 0x10d   :  { %2421 = shalt.err (!%p2418_p0)
}
 0x10e   :  { %s2422_s23 = scalar_lea.vmem %s321_s0, 1024  ;;  %p2427_p2 = scmp.lt.s32.totalorder %s321_s0, %s321_s0 }
 0x10f   :  { %p2423_p1 = scmp.ne.s32.totalorder %s321_s0, %s2422_s23  ;;  %p2428_p3 = scmp.lt.s32.totalorder %s2422_s23, %s2422_s23 }
 0x111   :  { %p2429_p4 = por %p2428_p3, %p2427_p2 }
 0x113   :  { %p2430_p5 = pnand %p2429_p4, %p2423_p1 }
 0x115   :  { %2433 = shalt.err (!%p2430_p5)
}
 0x116   :  { %326 = dma.hbm_to_vmem [thread:$0]  %s3507_s25, 1024, %s321_s0, [#allocation42], %s2796_s4, %s2796_s4, %s2797_s28  }
 0x117   :  { %s3546_s17 = sld [smem:[#allocation60_spill]] }
 0x11d   :  { %s2434_s29 = scalar_lea.hbm %s3546_s17, 256 }
 0x11e   :  { %p2435_p6 = scmp.ne.s32.totalorder %s3546_s17, %s2434_s29  ;;  %p2438_p7 = scmp.lt.u32.totalorder %s2434_s29, %s3546_s17 }
 0x120   :  { %p2440_p8 = pnand %p2438_p7, %p2435_p6 }
 0x122   :  { %2443 = shalt.err (!%p2440_p8)
}
 0x123   :  { %s2444_s15 = scalar_lea.vmem %s3178_s8, 256  ;;  %p2449_p10 = scmp.lt.s32.totalorder %s3178_s8, %s3178_s8 }
 0x124   :  { %p2445_p9 = scmp.ne.s32.totalorder %s3178_s8, %s2444_s15  ;;  %p2450_p11 = scmp.lt.s32.totalorder %s2444_s15, %s2444_s15 }
 0x126   :  { %p2451_p12 = por %p2450_p11, %p2449_p10 }
 0x128   :  { %p2452_p13 = pnand %p2451_p12, %p2445_p9 }
 0x12a   :  { %2455 = shalt.err (!%p2452_p13)
}
 0x12b   :  { %s2810_s25 = smov 128   ;;  %s2811_s4 = smov 8  }
 0x12c   :  { %58 = dma.hbm_to_vmem [thread:$0]  %s3546_s17, 256, %s3178_s8, [#allocation3], %s2810_s25, %s2810_s25, %s2811_s4  }
 0x12d   :  { %s2812_s2 = smov [#allocation7]   ;;  %s2813_s13 = smov [#allocation10]  }
 0x12e   :  { %s75_s3 = sshll.u32 %s2812_s2, 4  ;;  %s97_s24 = sshll.u32 %s2813_s13, 4  ;;  %s76_s3 = int_to_ptr.vmem [resolvable:$true] %s75_s3  ;;  %s98_s24 = int_to_ptr.vmem [resolvable:$true] %s97_s24 }
 0x12f   :  { %s3547_s10 = sld [smem:[#allocation62_spill]] }
 0x135   :  { %s2456_s11 = scalar_lea.hbm %s3547_s10, 16 }
 0x136   :  { %p2457_p0 = scmp.ne.s32.totalorder %s3547_s10, %s2456_s11  ;;  %p2460_p1 = scmp.lt.u32.totalorder %s2456_s11, %s3547_s10 }
 0x138   :  { %p2462_p2 = pnand %p2460_p1, %p2457_p0 }
 0x13a   :  { %2465 = shalt.err (!%p2462_p2)
}
 0x13b   :  { %s2466_s8 = scalar_lea.vmem %s76_s3, 16  ;;  %s2470_s26 = scalar_lea.vmem %s76_s3, 32 }
 0x13c   :  { %p2467_p3 = scmp.ne.s32.totalorder %s76_s3, %s2466_s8  ;;  %p2471_p4 = scmp.lt.s32.totalorder %s76_s3, %s76_s3 }
 0x13d   :  { %p2472_p5 = scmp.lt.s32.totalorder %s2470_s26, %s2466_s8 }
 0x13f   :  { %p2473_p6 = por %p2472_p5, %p2471_p4 }
 0x141   :  { %p2474_p7 = pnand %p2473_p6, %p2467_p3 }
 0x143   :  { %2477 = shalt.err (!%p2474_p7)
}
 0x144   :  { %78 = dma.hbm_to_vmem [thread:$0]  %s3547_s10, 16, %s76_s3, [#allocation6]  }
 0x145   :  { %s3548_s21 = sld [smem:[#allocation64_spill]] }
 0x14b   :  { %s2478_s7 = scalar_lea.hbm %s3548_s21, 16 }
 0x14c   :  { %p2479_p8 = scmp.ne.s32.totalorder %s3548_s21, %s2478_s7  ;;  %p2482_p9 = scmp.lt.u32.totalorder %s2478_s7, %s3548_s21 }
 0x14e   :  { %p2484_p10 = pnand %p2482_p9, %p2479_p8 }
 0x150   :  { %2487 = shalt.err (!%p2484_p10)
}
 0x151   :  { %s2488_s13 = scalar_lea.vmem %s98_s24, 16  ;;  %s2492_s19 = scalar_lea.vmem %s98_s24, 32 }
 0x152   :  { %p2489_p11 = scmp.ne.s32.totalorder %s98_s24, %s2488_s13  ;;  %p2493_p12 = scmp.lt.s32.totalorder %s98_s24, %s98_s24 }
 0x153   :  { %p2494_p13 = scmp.lt.s32.totalorder %s2492_s19, %s2488_s13 }
 0x155   :  { %p2495_p0 = por %p2494_p13, %p2493_p12 }
 0x157   :  { %p2496_p1 = pnand %p2495_p0, %p2489_p11 }
 0x159   :  { %2499 = shalt.err (!%p2496_p1)
}
 0x15a   :  { %100 = dma.hbm_to_vmem [thread:$0]  %s3548_s21, 16, %s98_s24, [#allocation9]  }
 0x15b   :  { %s2814_s10 = smov [#allocation13]   ;;  %s2815_s23 = smov [#allocation16]  }
 0x15c   :  { %s119_s11 = sshll.u32 %s2814_s10, 4  ;;  %s141_s9 = sshll.u32 %s2815_s23, 4  ;;  %s120_s11 = int_to_ptr.vmem [resolvable:$true] %s119_s11  ;;  %s142_s9 = int_to_ptr.vmem [resolvable:$true] %s141_s9 }
 0x15d   :  { %s3549_s8 = sld [smem:[#allocation66_spill]] }
 0x163   :  { %s2500_s26 = scalar_lea.hbm %s3549_s8, 16 }
 0x164   :  { %p2501_p2 = scmp.ne.s32.totalorder %s3549_s8, %s2500_s26  ;;  %p2504_p3 = scmp.lt.u32.totalorder %s2500_s26, %s3549_s8 }
 0x166   :  { %p2506_p4 = pnand %p2504_p3, %p2501_p2 }
 0x168   :  { %2509 = shalt.err (!%p2506_p4)
}
 0x169   :  { %s2510_s24 = scalar_lea.vmem %s120_s11, 16  ;;  %s2514_s21 = scalar_lea.vmem %s120_s11, 32 }
 0x16a   :  { %p2511_p5 = scmp.ne.s32.totalorder %s120_s11, %s2510_s24  ;;  %p2515_p6 = scmp.lt.s32.totalorder %s120_s11, %s120_s11 }
 0x16b   :  { %p2516_p7 = scmp.lt.s32.totalorder %s2514_s21, %s2510_s24 }
 0x16d   :  { %p2517_p8 = por %p2516_p7, %p2515_p6 }
 0x16f   :  { %p2518_p9 = pnand %p2517_p8, %p2511_p5 }
 0x171   :  { %2521 = shalt.err (!%p2518_p9)
}
 0x172   :  { %122 = dma.hbm_to_vmem [thread:$0]  %s3549_s8, 16, %s120_s11, [#allocation12]  }
 0x173   :  { %s3550_s2 = sld [smem:[#allocation68_spill]] }
 0x179   :  { %s2522_s13 = scalar_lea.hbm %s3550_s2, 16 }
 0x17a   :  { %p2523_p10 = scmp.ne.s32.totalorder %s3550_s2, %s2522_s13  ;;  %p2526_p11 = scmp.lt.u32.totalorder %s2522_s13, %s3550_s2 }
 0x17c   :  { %p2528_p12 = pnand %p2526_p11, %p2523_p10 }
 0x17e   :  { %2531 = shalt.err (!%p2528_p12)
}
 0x17f   :  { %s2532_s23 = scalar_lea.vmem %s142_s9, 16  ;;  %s2536_s1 = scalar_lea.vmem %s142_s9, 32 }
 0x180   :  { %p2533_p13 = scmp.ne.s32.totalorder %s142_s9, %s2532_s23  ;;  %p2537_p0 = scmp.lt.s32.totalorder %s142_s9, %s142_s9 }
 0x181   :  { %p2538_p1 = scmp.lt.s32.totalorder %s2536_s1, %s2532_s23 }
 0x183   :  { %p2539_p2 = por %p2538_p1, %p2537_p0 }
 0x185   :  { %p2540_p3 = pnand %p2539_p2, %p2533_p13 }
 0x187   :  { %2543 = shalt.err (!%p2540_p3)
}
 0x188   :  { %144 = dma.hbm_to_vmem [thread:$0]  %s3550_s2, 16, %s142_s9, [#allocation15]  }
 0x189   :  { %s2816_s8 = smov [#allocation19]   ;;  %s2817_s17 = smov [#allocation22]  }
 0x18a   :  { %s161_s26 = sshll.u32 %s2816_s8, 4  ;;  %s183_s29 = sshll.u32 %s2817_s17, 4  ;;  %s162_s26 = int_to_ptr.vmem [resolvable:$true] %s161_s26  ;;  %s184_s29 = int_to_ptr.vmem [resolvable:$true] %s183_s29 }
 0x18b   :  { %s3551_s24 = sld [smem:[#allocation70_spill]] }
 0x191   :  { %s2544_s21 = scalar_lea.hbm %s3551_s24, 16 }
 0x192   :  { %p2545_p4 = scmp.ne.s32.totalorder %s3551_s24, %s2544_s21  ;;  %p2548_p5 = scmp.lt.u32.totalorder %s2544_s21, %s3551_s24 }
 0x194   :  { %p2550_p6 = pnand %p2548_p5, %p2545_p4 }
 0x196   :  { %2553 = shalt.err (!%p2550_p6)
}
 0x197   :  { %s2554_s9 = scalar_lea.vmem %s162_s26, 16  ;;  %s2558_s2 = scalar_lea.vmem %s162_s26, 32 }
 0x198   :  { %p2555_p7 = scmp.ne.s32.totalorder %s162_s26, %s2554_s9  ;;  %p2559_p8 = scmp.lt.s32.totalorder %s162_s26, %s162_s26 }
 0x199   :  { %p2560_p9 = scmp.lt.s32.totalorder %s2558_s2, %s2554_s9 }
 0x19b   :  { %p2561_p10 = por %p2560_p9, %p2559_p8 }
 0x19d   :  { %p2562_p11 = pnand %p2561_p10, %p2555_p7 }
 0x19f   :  { %2565 = shalt.err (!%p2562_p11)
}
 0x1a0   :  { %164 = dma.hbm_to_vmem [thread:$0]  %s3551_s24, 16, %s162_s26, [#allocation18]  }
 0x1a1   :  { %s2566_s10 = scalar_lea.hbm %s3494_s12, 16 }
 0x1a2   :  { %p2567_p12 = scmp.ne.s32.totalorder %s3494_s12, %s2566_s10  ;;  %p2570_p13 = scmp.lt.u32.totalorder %s2566_s10, %s3494_s12 }
 0x1a4   :  { %p2572_p0 = pnand %p2570_p13, %p2567_p12 }
 0x1a6   :  { %2575 = shalt.err (!%p2572_p0)
}
 0x1a7   :  { %s2576_s8 = scalar_lea.vmem %s184_s29, 16  ;;  %s2580_s17 = scalar_lea.vmem %s184_s29, 32 }
 0x1a8   :  { %p2577_p1 = scmp.ne.s32.totalorder %s184_s29, %s2576_s8  ;;  %p2581_p2 = scmp.lt.s32.totalorder %s184_s29, %s184_s29 }
 0x1a9   :  { %p2582_p3 = scmp.lt.s32.totalorder %s2580_s17, %s2576_s8 }
 0x1ab   :  { %p2583_p4 = por %p2582_p3, %p2581_p2 }
 0x1ad   :  { %p2584_p5 = pnand %p2583_p4, %p2577_p1 }
 0x1af   :  { %2587 = shalt.err (!%p2584_p5)
}
 0x1b0   :  { %186 = dma.hbm_to_vmem [thread:$0]  %s3494_s12, 16, %s184_s29, [#allocation21]  }
 0x1b1   :  { %s2818_s6 = smov [#allocation25]   ;;  %s2819_s21 = smov [#allocation28]  }
 0x1b2   :  { %s203_s24 = sshll.u32 %s2818_s6, 4  ;;  %s225_s7 = sshll.u32 %s2819_s21, 4  ;;  %s204_s24 = int_to_ptr.vmem [resolvable:$true] %s203_s24  ;;  %s226_s7 = int_to_ptr.vmem [resolvable:$true] %s225_s7 }
 0x1b3   :  { %s2588_s0 = scalar_lea.hbm %s3496_s14, 16 }
 0x1b4   :  { %p2589_p6 = scmp.ne.s32.totalorder %s3496_s14, %s2588_s0  ;;  %p2592_p7 = scmp.lt.u32.totalorder %s2588_s0, %s3496_s14 }
 0x1b6   :  { %p2594_p8 = pnand %p2592_p7, %p2589_p6 }
 0x1b8   :  { %2597 = shalt.err (!%p2594_p8)
}
 0x1b9   :  { %s2598_s12 = scalar_lea.vmem %s204_s24, 16  ;;  %s2602_s29 = scalar_lea.vmem %s204_s24, 32 }
 0x1ba   :  { %p2599_p9 = scmp.ne.s32.totalorder %s204_s24, %s2598_s12  ;;  %p2603_p10 = scmp.lt.s32.totalorder %s204_s24, %s204_s24 }
 0x1bb   :  { %p2604_p11 = scmp.lt.s32.totalorder %s2602_s29, %s2598_s12 }
 0x1bd   :  { %p2605_p12 = por %p2604_p11, %p2603_p10 }
 0x1bf   :  { %p2606_p13 = pnand %p2605_p12, %p2599_p9 }
 0x1c1   :  { %2609 = shalt.err (!%p2606_p13)
}
 0x1c2   :  { %206 = dma.hbm_to_vmem [thread:$0]  %s3496_s14, 16, %s204_s24, [#allocation24]  }
 0x1c3   :  { %s2610_s1 = scalar_lea.hbm %s3498_s16, 16 }
 0x1c4   :  { %p2611_p0 = scmp.ne.s32.totalorder %s3498_s16, %s2610_s1  ;;  %p2614_p1 = scmp.lt.u32.totalorder %s2610_s1, %s3498_s16 }
 0x1c6   :  { %p2616_p2 = pnand %p2614_p1, %p2611_p0 }
 0x1c8   :  { %2619 = shalt.err (!%p2616_p2)
}
 0x1c9   :  { %s2620_s26 = scalar_lea.vmem %s226_s7, 16  ;;  %s2624_s5 = scalar_lea.vmem %s226_s7, 32 }
 0x1ca   :  { %p2621_p3 = scmp.ne.s32.totalorder %s226_s7, %s2620_s26  ;;  %p2625_p4 = scmp.lt.s32.totalorder %s226_s7, %s226_s7 }
 0x1cb   :  { %p2626_p5 = scmp.lt.s32.totalorder %s2624_s5, %s2620_s26 }
 0x1cd   :  { %p2627_p6 = por %p2626_p5, %p2625_p4 }
 0x1cf   :  { %p2628_p7 = pnand %p2627_p6, %p2621_p3 }
 0x1d1   :  { %2631 = shalt.err (!%p2628_p7)
}
 0x1d2   :  { %228 = dma.hbm_to_vmem [thread:$0]  %s3498_s16, 16, %s226_s7, [#allocation27]  }
 0x1d3   :  { %s2820_s24 = smov [#allocation31]   ;;  %s2821_s15 = smov [#allocation34]  }
 0x1d4   :  { %s245_s21 = sshll.u32 %s2820_s24, 4  ;;  %s267_s28 = sshll.u32 %s2821_s15, 4  ;;  %s246_s21 = int_to_ptr.vmem [resolvable:$true] %s245_s21  ;;  %s268_s28 = int_to_ptr.vmem [resolvable:$true] %s267_s28 }
 0x1d5   :  { %s2632_s2 = scalar_lea.hbm %s3500_s18, 16 }
 0x1d6   :  { %p2633_p8 = scmp.ne.s32.totalorder %s3500_s18, %s2632_s2  ;;  %p2636_p9 = scmp.lt.u32.totalorder %s2632_s2, %s3500_s18 }
 0x1d8   :  { %p2638_p10 = pnand %p2636_p9, %p2633_p8 }
 0x1da   :  { %2641 = shalt.err (!%p2638_p10)
}
 0x1db   :  { %s2642_s16 = scalar_lea.vmem %s246_s21, 16  ;;  %s2646_s7 = scalar_lea.vmem %s246_s21, 32 }
 0x1dc   :  { %p2643_p11 = scmp.ne.s32.totalorder %s246_s21, %s2642_s16  ;;  %p2647_p12 = scmp.lt.s32.totalorder %s246_s21, %s246_s21 }
 0x1dd   :  { %p2648_p13 = scmp.lt.s32.totalorder %s2646_s7, %s2642_s16 }
 0x1df   :  { %p2649_p0 = por %p2648_p13, %p2647_p12 }
 0x1e1   :  { %p2650_p1 = pnand %p2649_p0, %p2643_p11 }
 0x1e3   :  { %2653 = shalt.err (!%p2650_p1)
}
 0x1e4   :  { %248 = dma.hbm_to_vmem [thread:$0]  %s3500_s18, 16, %s246_s21, [#allocation30]  }
 0x1e5   :  { %s2654_s1 = scalar_lea.hbm %s3502_s20, 16 }
 0x1e6   :  { %p2655_p2 = scmp.ne.s32.totalorder %s3502_s20, %s2654_s1  ;;  %p2658_p3 = scmp.lt.u32.totalorder %s2654_s1, %s3502_s20 }
 0x1e8   :  { %p2660_p4 = pnand %p2658_p3, %p2655_p2 }
 0x1ea   :  { %2663 = shalt.err (!%p2660_p4)
}
 0x1eb   :  { %s2664_s26 = scalar_lea.vmem %s268_s28, 16  ;;  %s2668_s5 = scalar_lea.vmem %s268_s28, 32 }
 0x1ec   :  { %p2665_p5 = scmp.ne.s32.totalorder %s268_s28, %s2664_s26  ;;  %p2669_p6 = scmp.lt.s32.totalorder %s268_s28, %s268_s28 }
 0x1ed   :  { %p2670_p7 = scmp.lt.s32.totalorder %s2668_s5, %s2664_s26 }
 0x1ef   :  { %p2671_p8 = por %p2670_p7, %p2669_p6 }
 0x1f1   :  { %p2672_p9 = pnand %p2671_p8, %p2665_p5 }
 0x1f3   :  { %2675 = shalt.err (!%p2672_p9)
}
 0x1f4   :  { %270 = dma.hbm_to_vmem [thread:$0]  %s3502_s20, 16, %s268_s28, [#allocation33]  }
 0x1f5   :  { %s2822_s6 = smov [#allocation37]   ;;  %s2823_s21 = smov [#allocation40]  }
 0x1f6   :  { %s289_s24 = sshll.u32 %s2822_s6, 4  ;;  %s311_s15 = sshll.u32 %s2823_s21, 4  ;;  %s290_s24 = int_to_ptr.vmem [resolvable:$true] %s289_s24  ;;  %s312_s15 = int_to_ptr.vmem [resolvable:$true] %s311_s15 }
 0x1f7   :  { %s2676_s2 = scalar_lea.hbm %s3504_s22, 16 }
 0x1f8   :  { %p2677_p10 = scmp.ne.s32.totalorder %s3504_s22, %s2676_s2  ;;  %p2680_p11 = scmp.lt.u32.totalorder %s2676_s2, %s3504_s22 }
 0x1fa   :  { %p2682_p12 = pnand %p2680_p11, %p2677_p10 }
 0x1fc   :  { %2685 = shalt.err (!%p2682_p12)
}
 0x1fd   :  { %s2686_s20 = scalar_lea.vmem %s290_s24, 16  ;;  %s2690_s28 = scalar_lea.vmem %s290_s24, 32 }
 0x1fe   :  { %p2687_p13 = scmp.ne.s32.totalorder %s290_s24, %s2686_s20  ;;  %p2691_p0 = scmp.lt.s32.totalorder %s290_s24, %s290_s24 }
 0x1ff   :  { %p2692_p1 = scmp.lt.s32.totalorder %s2690_s28, %s2686_s20 }
 0x201   :  { %p2693_p2 = por %p2692_p1, %p2691_p0 }
 0x203   :  { %p2694_p3 = pnand %p2693_p2, %p2687_p13 }
 0x205   :  { %2697 = shalt.err (!%p2694_p3)
}
 0x206   :  { %292 = dma.hbm_to_vmem [thread:$0]  %s3504_s22, 16, %s290_s24, [#allocation36]  }
 0x207   :  { %s3552_s10 = sld [smem:[#allocation72_spill]] }
 0x20d   :  { %s2698_s23 = scalar_lea.hbm %s3552_s10, 16 }
 0x20e   :  { %p2699_p4 = scmp.ne.s32.totalorder %s3552_s10, %s2698_s23  ;;  %p2702_p5 = scmp.lt.u32.totalorder %s2698_s23, %s3552_s10 }
 0x210   :  { %p2704_p6 = pnand %p2702_p5, %p2699_p4 }
 0x212   :  { %2707 = shalt.err (!%p2704_p6)
}
 0x213   :  { %s2708_s17 = scalar_lea.vmem %s312_s15, 16  ;;  %s2712_s26 = scalar_lea.vmem %s312_s15, 32 }
 0x214   :  { %p2709_p7 = scmp.ne.s32.totalorder %s312_s15, %s2708_s17  ;;  %p2713_p8 = scmp.lt.s32.totalorder %s312_s15, %s312_s15 }
 0x215   :  { %p2714_p9 = scmp.lt.s32.totalorder %s2712_s26, %s2708_s17 }
 0x217   :  { %p2715_p10 = por %p2714_p9, %p2713_p8 }
 0x219   :  { %p2716_p11 = pnand %p2715_p10, %p2709_p7 }
 0x21b   :  { %2719 = shalt.err (!%p2716_p11)
}
 0x21c   :  { %314 = dma.hbm_to_vmem [thread:$0]  %s3552_s10, 16, %s312_s15, [#allocation39]  }
 0x21d   :  { %s2824_s18 = smov [#allocation43]   ;;  %s3553_s21 = sld [smem:[#allocation73_spill]] }
 0x21e   :  { %s333_s14 = sshll.u32 %s2824_s18, 4  ;;  %s334_s14 = int_to_ptr.vmem [resolvable:$true] %s333_s14 }
 0x223   :  { %s2720_s0 = scalar_lea.hbm %s3553_s21, 16 }
 0x224   :  { %p2721_p12 = scmp.ne.s32.totalorder %s3553_s21, %s2720_s0  ;;  %p2724_p13 = scmp.lt.u32.totalorder %s2720_s0, %s3553_s21 }
 0x226   :  { %p2726_p0 = pnand %p2724_p13, %p2721_p12 }
 0x228   :  { %2729 = shalt.err (!%p2726_p0)
}
 0x229   :  { %s2730_s12 = scalar_lea.vmem %s334_s14, 16  ;;  %s2734_s15 = scalar_lea.vmem %s334_s14, 32 }
 0x22a   :  { %p2731_p1 = scmp.ne.s32.totalorder %s334_s14, %s2730_s12  ;;  %p2735_p2 = scmp.lt.s32.totalorder %s334_s14, %s334_s14 }
 0x22b   :  { %p2736_p3 = scmp.lt.s32.totalorder %s2734_s15, %s2730_s12 }
 0x22d   :  { %p2737_p4 = por %p2736_p3, %p2735_p2 }
 0x22f   :  { %p2738_p5 = pnand %p2737_p4, %p2731_p1 }
 0x231   :  { %2741 = shalt.err (!%p2738_p5)
}
 0x232   :  { %336 = dma.hbm_to_vmem [thread:$0]  %s3553_s21, 16, %s334_s14, [#allocation42]  }
 0x233   :  { %2764 = dma.done.wait [#allocation3], 256  }
 0x234   :  { %2765 = vsyncadd [#allocation3], 4294967040 }
 0x235   :  { %2766 = dma.done.wait [#allocation6], 80  }
 0x236   :  { %2767 = vsyncadd [#allocation6], 4294967216 }
 0x237   :  { %2768 = dma.done.wait [#allocation9], 1040  }
 0x238   :  { %2769 = vsyncadd [#allocation9], 4294966256 }
 0x239   :  { %2770 = dma.done.wait [#allocation12], 1040  }
 0x23a   :  { %2771 = vsyncadd [#allocation12], 4294966256 }
 0x23b   :  { %2772 = dma.done.wait [#allocation15], 1040  }
 0x23c   :  { %2773 = vsyncadd [#allocation15], 4294966256 }
 0x23d   :  { %2774 = dma.done.wait [#allocation18], 32  }
 0x23e   :  { %2775 = vsyncadd [#allocation18], 4294967264 }
 0x23f   :  { %2776 = dma.done.wait [#allocation21], 1040  }
 0x240   :  { %2777 = vsyncadd [#allocation21], 4294966256 }
 0x241   :  { %2778 = dma.done.wait [#allocation24], 32  }
 0x242   :  { %2779 = vsyncadd [#allocation24], 4294967264 }
 0x243   :  { %2780 = dma.done.wait [#allocation27], 1040  }
 0x244   :  { %2781 = vsyncadd [#allocation27], 4294966256 }
 0x245   :  { %2782 = dma.done.wait [#allocation30], 32  }
 0x246   :  { %2783 = vsyncadd [#allocation30], 4294967264 }
 0x247   :  { %2784 = dma.done.wait [#allocation33], 1040  }
 0x248   :  { %2785 = vsyncadd [#allocation33], 4294966256 }
 0x249   :  { %2786 = dma.done.wait [#allocation36], 1040  }
 0x24a   :  { %2787 = vsyncadd [#allocation36], 4294966256 }
 0x24b   :  { %2788 = dma.done.wait [#allocation39], 1040  }
 0x24c   :  { %2789 = vsyncadd [#allocation39], 4294966256 }
 0x24d   :  { %2790 = dma.done.wait [#allocation42], 1040  }
 0x24e   :  { %2791 = vsyncadd [#allocation42], 4294966256  ;;  %v2825_v0 = vmov 0.0   ;;  %vm2826_vm0 = vmmov 0   ;;  %vm434_vm1 = vcmask 1043456   ;;  %v419_v2 = vld [vmem:[#allocation2] sm:$0xff] }
 0x24f   :  { %1850 = vmatprep.subr.bf16.mxu0 %v2825_v0  ;;  %1852 = vmatprep.mubr.msk.bf16.mxu0 %vm2826_vm0, %v2825_v0  ;;  %v421_v1 = vld [vmem:[#allocation5] sm:$0xf]  ;;  %v420_v3 = vld [vmem:[#allocation2 + $0x8] sm:$0xff]  ;;  %v2070_v6 = vld [vmem:[#allocation8] sm:$0xff]   ;;  %vm430_vm2 = vcmask 64512   ;;  %s2827_s28 = smov [#allocation44]  }
 0x250   :  { %1856 = vmatprep.subr.bf16.mxu1 %v2825_v0  ;;  %1872 = vmatprep.mubr.msk.bf16.mxu1 %vm2826_vm0, %v2825_v0  ;;  %v436_v4 = vsel %vm434_vm1, %v421_v1, 0  ;;  %v423_v5 = vpack.c.bf16 %v420_v3, %v419_v2  ;;  %v2071_v7 = vld [vmem:[#allocation8 + $0x8] sm:$0xff]   ;;  %v2072_v8 = vld [vmem:[#allocation8 + $0x10] sm:$0xff]   ;;  %v2073_v9 = vld [vmem:[#allocation8 + $0x18] sm:$0xff]   ;;  %s1653_s16 = sshll.u32 %s2827_s28, 4  ;;  %s1654_s16 = int_to_ptr.vmem [resolvable:$true] %s1653_s16 }
 0x251   :  { %1851 = vmatpush3.bf16.msra.mxu0 %v436_v4  ;;  %1857 = vmatpush3.bf16.msra.mxu1 %v2070_v6  ;;  %v2074_v10 = vld [vmem:[#allocation8 + $0x20] sm:$0xff]   ;;  %v2075_v11 = vld [vmem:[#allocation8 + $0x28] sm:$0xff]   ;;  %v2076_v12 = vld [vmem:[#allocation8 + $0x30] sm:$0xff]   ;;  %s2742_s7 = scalar_lea.vmem %s1654_s16, 256  ;;  %p2747_p7 = scmp.lt.s32.totalorder %s1654_s16, %s1654_s16 }
 0x252   :  { %1876 = vmatprep.subr.bf16.mxu0 %v2825_v0  ;;  %1858 = vmatprep.subr.bf16.mxu1 %v2825_v0  ;;  %v2077_v13 = vld [vmem:[#allocation8 + $0x38] sm:$0xff]   ;;  %v2078_v14 = vld [vmem:[#allocation11] sm:$0xff]   ;;  %v2079_v15 = vld [vmem:[#allocation11 + $0x8] sm:$0xff]   ;;  %p2743_p6 = scmp.ne.s32.totalorder %s1654_s16, %s2742_s7  ;;  %p2748_p8 = scmp.lt.s32.totalorder %s2742_s7, %s2742_s7 }
 0x253   :  { %v2080_v16 = vld [vmem:[#allocation11 + $0x10] sm:$0xff]   ;;  %v2081_v17 = vld [vmem:[#allocation11 + $0x18] sm:$0xff]   ;;  %v2082_v18 = vld [vmem:[#allocation11 + $0x20] sm:$0xff]  }
 0x254   :  { %1853 = vmatmul.mubr.msk.bf16.vlgmr.msra.gmra.mrb[0].mxu0 %vm430_vm2, %v423_v5  ;;  %v2083_v19 = vld [vmem:[#allocation11 + $0x28] sm:$0xff]   ;;  %v1678_v20 = vld [vmem:[#allocation7] ss:$0 sm:$0xff]  ;;  %v2084_v30 = vld [vmem:[#allocation11 + $0x30] sm:$0xff]   ;;  %p2749_p9 = por %p2748_p8, %p2747_p7 }
 0x255   :  { %1892 = vmatprep.mubr.msk.bf16.mxu0 %vm2826_vm0, %v2825_v0  ;;  %1859 = vmatpush3.bf16.msra.mxu1 %v2071_v7  ;;  %v2085_v31 = vld [vmem:[#allocation11 + $0x38] sm:$0xff]   ;;  %v2086_v32 = vld [vmem:[#allocation14] sm:$0xff]   ;;  %v2087_v33 = vld [vmem:[#allocation14 + $0x8] sm:$0xff]  }
 0x256   :  { %1860 = vmatprep.subr.bf16.mxu1 %v2825_v0  ;;  %1877 = vmatpush3.bf16.msra.mxu0 %v2078_v14  ;;  %v2088_v34 = vld [vmem:[#allocation14 + $0x10] sm:$0xff]   ;;  %v2089_v35 = vld [vmem:[#allocation14 + $0x18] sm:$0xff]   ;;  %v2090_v36 = vld [vmem:[#allocation14 + $0x20] sm:$0xff]   ;;  %p2750_p10 = pnand %p2749_p9, %p2743_p6 }
 0x257   :  { %1878 = vmatprep.subr.bf16.mxu0 %v2825_v0  ;;  %v2091_v37 = vld [vmem:[#allocation14 + $0x28] sm:$0xff]   ;;  %v1680_v38 = vld [vmem:[#allocation10] ss:$0 sm:$0xff]  ;;  %v2092_v48 = vld [vmem:[#allocation14 + $0x30] sm:$0xff]  }
 0x258   :  { %v2093_v49 = vld [vmem:[#allocation14 + $0x38] sm:$0xff]   ;;  %v2094_v58 = vld [vmem:[#allocation20] sm:$0xff]   ;;  %v2095_v59 = vld [vmem:[#allocation20 + $0x8] sm:$0xff]  }
 0x259   :  { %1861 = vmatpush3.bf16.msra.mxu1 %v2072_v8  ;;  %v1689_v50 = vld [vmem:[#allocation13] ss:$0 sm:$0xff]  ;;  %v2096_v60 = vld [vmem:[#allocation20 + $0x10] sm:$0xff]   ;;  %v2098_v62 = vld [vmem:[#allocation20 + $0x20] sm:$0xff]  }
 0x25a   :  { %1862 = vmatprep.subr.bf16.mxu1 %v2825_v0  ;;  %1879 = vmatpush3.bf16.msra.mxu0 %v2079_v15  ;;  %v2097_v61 = vld [vmem:[#allocation20 + $0x18] sm:$0xff]   ;;  %v2099_v63 = vld [vmem:[#allocation20 + $0x28] sm:$0xff]   ;;  %v2100_v1 = vld [vmem:[#allocation20 + $0x30] sm:$0xff]  }
 0x25b   :  { %1880 = vmatprep.subr.bf16.mxu0 %v2825_v0  ;;  %v2101_v2 = vld [vmem:[#allocation20 + $0x38] sm:$0xff]  }
 0x25c   :  { %v1698_v3 = vld [vmem:[#allocation16] ss:$0 sm:$0xff] }
 0x25d   :  { %1863 = vmatpush3.bf16.msra.mxu1 %v2073_v9 }
 0x25e   :  { %1864 = vmatprep.subr.bf16.mxu1 %v2825_v0  ;;  %1881 = vmatpush3.bf16.msra.mxu0 %v2080_v16 }
 0x25f   :  { %1882 = vmatprep.subr.bf16.mxu0 %v2825_v0 }
 0x261   :  { %1865 = vmatpush3.bf16.msra.mxu1 %v2074_v10 }
 0x262   :  { %1866 = vmatprep.subr.bf16.mxu1 %v2825_v0  ;;  %1883 = vmatpush3.bf16.msra.mxu0 %v2081_v17 }
 0x263   :  { %1884 = vmatprep.subr.bf16.mxu0 %v2825_v0 }
 0x265   :  { %1867 = vmatpush3.bf16.msra.mxu1 %v2075_v11 }
 0x266   :  { %1868 = vmatprep.subr.bf16.mxu1 %v2825_v0  ;;  %1885 = vmatpush3.bf16.msra.mxu0 %v2082_v18 }
 0x267   :  { %1886 = vmatprep.subr.bf16.mxu0 %v2825_v0 }
 0x269   :  { %1869 = vmatpush3.bf16.msra.mxu1 %v2076_v12 }
 0x26a   :  { %1870 = vmatprep.subr.bf16.mxu1 %v2825_v0  ;;  %1887 = vmatpush3.bf16.msra.mxu0 %v2083_v19 }
 0x26b   :  { %1888 = vmatprep.subr.bf16.mxu0 %v2825_v0 }
 0x26d   :  { %1871 = vmatpush3.bf16.msra.mxu1 %v2077_v13 }
 0x26e   :  { %1896 = vmatprep.subr.bf16.mxu1 %v2825_v0  ;;  %1889 = vmatpush3.bf16.msra.mxu0 %v2084_v30 }
 0x26f   :  { %1890 = vmatprep.subr.bf16.mxu0 %v2825_v0 }
 0x272   :  { %1891 = vmatpush3.bf16.msra.mxu0 %v2085_v31 }
 0x273   :  { %1916 = vmatprep.subr.bf16.mxu0 %v2825_v0 }
 0x327   :  { %v472_v21 = vpop.f32.mrb[0].mxu0 }
 0x328   :  { %v473_v22 = vadd.f32 %v1678_v20, %v472_v21  ;;  %v1854_v23 = vpop.f32.mrb[1].mxu0 }
 0x329   :  { %v475_v24 = vpop.f32.mrb[2].mxu0 }
 0x32a   :  { %v476_v25 = vadd.f32 %v1678_v20, %v475_v24  ;;  %v1855_v26 = vpop.f32.mrb[3].mxu0  ;;  %v479_v27 = vmax.f32 %v473_v22, 0.0 }
 0x32c   :  { %v480_v28 = vmax.f32 %v476_v25, 0.0 }
 0x32e   :  { %v498_v29 = vpack.c.bf16 %v480_v28, %v479_v27 }
 0x330   :  { %1873 = vmatmul.mubr.bf16.vlgmr.msra.gmra.mrb[0].mxu1 %v498_v29 }
 0x331   :  { %1912 = vmatprep.mubr.msk.bf16.mxu1 %vm2826_vm0, %v2825_v0  ;;  %1897 = vmatpush3.bf16.msra.mxu1 %v2086_v32 }
 0x332   :  { %1898 = vmatprep.subr.bf16.mxu1 %v2825_v0 }
 0x335   :  { %1899 = vmatpush3.bf16.msra.mxu1 %v2087_v33 }
 0x336   :  { %1900 = vmatprep.subr.bf16.mxu1 %v2825_v0 }
 0x339   :  { %1901 = vmatpush3.bf16.msra.mxu1 %v2088_v34 }
 0x33a   :  { %1902 = vmatprep.subr.bf16.mxu1 %v2825_v0 }
 0x33d   :  { %1903 = vmatpush3.bf16.msra.mxu1 %v2089_v35  ;;  %v1707_v35 = vld [vmem:[#allocation17] ss:$0 sm:$0xff] }
 0x33e   :  { %1904 = vmatprep.subr.bf16.mxu1 %v2825_v0 }
 0x341   :  { %1905 = vmatpush3.bf16.msra.mxu1 %v2090_v36 }
 0x342   :  { %1906 = vmatprep.subr.bf16.mxu1 %v2825_v0 }
 0x345   :  { %1907 = vmatpush3.bf16.msra.mxu1 %v2091_v37 }
 0x346   :  { %1908 = vmatprep.subr.bf16.mxu1 %v2825_v0 }
 0x349   :  { %1909 = vmatpush3.bf16.msra.mxu1 %v2092_v48  ;;  %v2104_v48 = vld [vmem:[#allocation26 + $0x10] sm:$0xff]  }
 0x34a   :  { %1910 = vmatprep.subr.bf16.mxu1 %v2825_v0 }
 0x34d   :  { %1911 = vmatpush3.bf16.msra.mxu1 %v2093_v49  ;;  %v2105_v49 = vld [vmem:[#allocation26 + $0x18] sm:$0xff]  }
 0x34e   :  { %1936 = vmatprep.subr.bf16.mxu1 %v2825_v0 }
 0x403   :  { %v587_v39 = vpop.f32.mrb[0].mxu1 }
 0x404   :  { %v588_v40 = vadd.f32 %v1680_v38, %v587_v39  ;;  %v1874_v41 = vpop.f32.mrb[1].mxu1 }
 0x405   :  { %v590_v42 = vpop.f32.mrb[2].mxu1 }
 0x406   :  { %v591_v43 = vadd.f32 %v1680_v38, %v590_v42  ;;  %v1875_v44 = vpop.f32.mrb[3].mxu1  ;;  %v594_v45 = vmax.f32 %v588_v40, 0.0  ;;  %v1708_v38 = vld [vmem:[#allocation19] ss:$0 sm:$0xff] }
 0x408   :  { %v595_v46 = vmax.f32 %v591_v43, 0.0 }
 0x40a   :  { %v613_v47 = vpack.c.bf16 %v595_v46, %v594_v45  ;;  %v2102_v46 = vld [vmem:[#allocation26] sm:$0xff]  }
 0x40c   :  { %1893 = vmatmul.mubr.bf16.vlgmr.msra.gmra.mrb[4].mxu0 %v613_v47  ;;  %v2103_v47 = vld [vmem:[#allocation26 + $0x8] sm:$0xff]  }
 0x40d   :  { %1932 = vmatprep.mubr.msk.bf16.mxu0 %vm2826_vm0, %v2825_v0  ;;  %1917 = vmatpush3.bf16.msra.mxu0 %v2094_v58 }
 0x40e   :  { %1918 = vmatprep.subr.bf16.mxu0 %v2825_v0 }
 0x411   :  { %1919 = vmatpush3.bf16.msra.mxu0 %v2095_v59 }
 0x412   :  { %1920 = vmatprep.subr.bf16.mxu0 %v2825_v0 }
 0x415   :  { %1921 = vmatpush3.bf16.msra.mxu0 %v2096_v60 }
 0x416   :  { %1922 = vmatprep.subr.bf16.mxu0 %v2825_v0 }
 0x419   :  { %1923 = vmatpush3.bf16.msra.mxu0 %v2097_v61 }
 0x41a   :  { %1924 = vmatprep.subr.bf16.mxu0 %v2825_v0 }
 0x41d   :  { %1925 = vmatpush3.bf16.msra.mxu0 %v2098_v62 }
 0x41e   :  { %1926 = vmatprep.subr.bf16.mxu0 %v2825_v0 }
 0x421   :  { %1927 = vmatpush3.bf16.msra.mxu0 %v2099_v63 }
 0x422   :  { %1928 = vmatprep.subr.bf16.mxu0 %v2825_v0 }
 0x425   :  { %1929 = vmatpush3.bf16.msra.mxu0 %v2100_v1 }
 0x426   :  { %1930 = vmatprep.subr.bf16.mxu0 %v2825_v0 }
 0x429   :  { %1931 = vmatpush3.bf16.msra.mxu0 %v2101_v2 }
 0x42a   :  { %1956 = vmatprep.subr.bf16.mxu0 %v2825_v0 }
 0x4df   :  { %v702_v51 = vpop.f32.mrb[4].mxu0 }
 0x4e0   :  { %v1894_v52 = vpop.f32.mrb[5].mxu0  ;;  %v703_v54 = vadd.f32 %v1689_v50, %v702_v51  ;;  %v2107_v51 = vld [vmem:[#allocation26 + $0x28] sm:$0xff]  }
 0x4e1   :  { %v705_v53 = vpop.f32.mrb[6].mxu0  ;;  %v2108_v52 = vld [vmem:[#allocation26 + $0x30] sm:$0xff]  }
 0x4e2   :  { %v706_v55 = vadd.f32 %v1689_v50, %v705_v53  ;;  %v1895_v56 = vpop.f32.mrb[7].mxu0  ;;  %v2106_v50 = vld [vmem:[#allocation26 + $0x20] sm:$0xff]   ;;  %v2109_v53 = vld [vmem:[#allocation26 + $0x38] sm:$0xff]  }
 0x4e4   :  { %v726_v57 = vpack.c.bf16 %v706_v55, %v703_v54  ;;  %v1709_v54 = vld [vmem:[#allocation22] ss:$0 sm:$0xff] }
 0x4e6   :  { %1913 = vmatmul.mubr.bf16.vlgmr.msra.gmra.mrb[4].mxu1 %v726_v57 }
 0x4e7   :  { %1952 = vmatprep.mubr.msk.bf16.mxu1 %vm2826_vm0, %v2825_v0  ;;  %1937 = vmatpush3.bf16.msra.mxu1 %v2102_v46  ;;  %v2122_v46 = vld [vmem:[#allocation35 + $0x20] sm:$0xff]  }
 0x4e8   :  { %1938 = vmatprep.subr.bf16.mxu1 %v2825_v0 }
 0x4eb   :  { %1939 = vmatpush3.bf16.msra.mxu1 %v2103_v47  ;;  %v2123_v47 = vld [vmem:[#allocation35 + $0x28] sm:$0xff]  }
 0x4ec   :  { %1940 = vmatprep.subr.bf16.mxu1 %v2825_v0 }
 0x4ef   :  { %1941 = vmatpush3.bf16.msra.mxu1 %v2104_v48  ;;  %v1720_v48 = vld [vmem:[#allocation28] ss:$0 sm:$0xff] }
 0x4f0   :  { %1942 = vmatprep.subr.bf16.mxu1 %v2825_v0 }
 0x4f3   :  { %1943 = vmatpush3.bf16.msra.mxu1 %v2105_v49 }
 0x4f4   :  { %1944 = vmatprep.subr.bf16.mxu1 %v2825_v0 }
 0x4f7   :  { %1945 = vmatpush3.bf16.msra.mxu1 %v2106_v50 }
 0x4f8   :  { %1946 = vmatprep.subr.bf16.mxu1 %v2825_v0 }
 0x4fb   :  { %1947 = vmatpush3.bf16.msra.mxu1 %v2107_v51 }
 0x4fc   :  { %1948 = vmatprep.subr.bf16.mxu1 %v2825_v0 }
 0x4ff   :  { %1949 = vmatpush3.bf16.msra.mxu1 %v2108_v52 }
 0x500   :  { %1950 = vmatprep.subr.bf16.mxu1 %v2825_v0 }
 0x503   :  { %1951 = vmatpush3.bf16.msra.mxu1 %v2109_v53 }
 0x504   :  { %1976 = vmatprep.subr.bf16.mxu1 %v2825_v0 }
 0x5b9   :  { %v815_v4 = vpop.f32.mrb[4].mxu1 }
 0x5ba   :  { %v816_v5 = vadd.f32 %v1698_v3, %v815_v4  ;;  %v1914_v6 = vpop.f32.mrb[5].mxu1 }
 0x5bb   :  { %v818_v7 = vpop.f32.mrb[6].mxu1 }
 0x5bc   :  { %v819_v8 = vadd.f32 %v1698_v3, %v818_v7  ;;  %v1915_v9 = vpop.f32.mrb[7].mxu1  ;;  %v833_v10 = vmul.f32 %v816_v5, %v816_v5 }
 0x5be   :  { %v824_v11 = vadd.f32 %v819_v8, %v816_v5  ;;  %v834_v12 = vmul.f32 %v819_v8, %v819_v8 }
 0x5c0   :  { %v825_v13 = vrot.slane %v824_v11, 4  ;;  %v835_v14 = vadd.f32 %v834_v12, %v833_v10 }
 0x5c2   :  { %v826_v15 = vadd.f32 %v825_v13, %v824_v11  ;;  %v836_v16 = vrot.slane %v835_v14, 4 }
 0x5c4   :  { %v827_v17 = vrot.slane %v826_v15, 2  ;;  %v837_v18 = vadd.f32 %v836_v16, %v835_v14 }
 0x5c6   :  { %v828_v19 = vadd.f32 %v827_v17, %v826_v15  ;;  %v838_v20 = vrot.slane %v837_v18, 2 }
 0x5c8   :  { %v829_v21 = vrot.slane %v828_v19, 1  ;;  %v839_v22 = vadd.f32 %v838_v20, %v837_v18 }
 0x5ca   :  { %v830_v23 = vadd.f32 %v829_v21, %v828_v19  ;;  %v840_v24 = vrot.slane %v839_v22, 1 }
 0x5cc   :  { %v832_v25 = vmul.f32 0.0625, %v830_v23  ;;  %v841_v26 = vadd.f32 %v840_v24, %v839_v22  ;;  %v1718_v23 = vld [vmem:[#allocation23] ss:$0 sm:$0xff] }
 0x5ce   :  { %v842_v27 = vmul.f32 0.0625, %v841_v26  ;;  %v843_v28 = vmul.f32 %v832_v25, %v832_v25  ;;  %v846_v29 = vsub.f32 %v816_v5, %v832_v25  ;;  %v847_v30 = vsub.f32 %v819_v8, %v832_v25  ;;  %v1719_v26 = vld [vmem:[#allocation25] ss:$0 sm:$0xff] }
 0x5d0   :  { %v844_v31 = vsub.f32 %v842_v27, %v843_v28 }
 0x5d2   :  { %v845_v32 = vmax.f32 %v844_v31, 0.0 }
 0x5d4   :  { %v848_v33 = vadd.f32 1e-05, %v845_v32 }
 0x5d6   :  { %2142 = vrsqrt.f32 %v848_v33 }
 0x5e0   :  { %v2143_v34 = vpop.eup %2142 }
 0x5e1   :  { %v850_v36 = vmul.f32 %v2143_v34, %v846_v29  ;;  %v851_v37 = vmul.f32 %v2143_v34, %v847_v30  ;;  %v2110_v34 = vld [vmem:[#allocation32] sm:$0xff]  }
 0x5e3   :  { %v858_v39 = vmul.f32 %v1707_v35, %v850_v36  ;;  %v859_v40 = vmul.f32 %v1707_v35, %v851_v37  ;;  %v2111_v35 = vld [vmem:[#allocation32 + $0x8] sm:$0xff]   ;;  %v2112_v36 = vld [vmem:[#allocation32 + $0x10] sm:$0xff]   ;;  %v2113_v37 = vld [vmem:[#allocation32 + $0x18] sm:$0xff]  }
 0x5e5   :  { %v866_v41 = vadd.f32 %v1708_v38, %v858_v39  ;;  %v867_v42 = vadd.f32 %v1708_v38, %v859_v40  ;;  %v2114_v38 = vld [vmem:[#allocation32 + $0x20] sm:$0xff]   ;;  %v2115_v39 = vld [vmem:[#allocation32 + $0x28] sm:$0xff]   ;;  %v2116_v40 = vld [vmem:[#allocation32 + $0x30] sm:$0xff]  }
 0x5e7   :  { %v868_v43 = vmax.f32 %v866_v41, 0.0  ;;  %v869_v44 = vmax.f32 %v867_v42, 0.0  ;;  %v2117_v41 = vld [vmem:[#allocation32 + $0x38] sm:$0xff]   ;;  %v2118_v42 = vld [vmem:[#allocation35] sm:$0xff]  }
 0x5e9   :  { %v887_v45 = vpack.c.bf16 %v869_v44, %v868_v43  ;;  %v2119_v43 = vld [vmem:[#allocation35 + $0x8] sm:$0xff]   ;;  %v2120_v44 = vld [vmem:[#allocation35 + $0x10] sm:$0xff]  }
 0x5eb   :  { %1933 = vmatmul.mubr.bf16.vlgmr.msra.gmra.mrb[8].mxu0 %v887_v45  ;;  %v2121_v45 = vld [vmem:[#allocation35 + $0x18] sm:$0xff]  }
 0x5ec   :  { %1972 = vmatprep.mubr.msk.bf16.mxu0 %vm2826_vm0, %v2825_v0  ;;  %1957 = vmatpush3.bf16.msra.mxu0 %v2110_v34  ;;  %v2130_v34 = vld [vmem:[#allocation38 + $0x20] sm:$0xff]  }
 0x5ed   :  { %1958 = vmatprep.subr.bf16.mxu0 %v2825_v0 }
 0x5f0   :  { %1959 = vmatpush3.bf16.msra.mxu0 %v2111_v35  ;;  %v2131_v35 = vld [vmem:[#allocation38 + $0x28] sm:$0xff]  }
 0x5f1   :  { %1960 = vmatprep.subr.bf16.mxu0 %v2825_v0 }
 0x5f4   :  { %1961 = vmatpush3.bf16.msra.mxu0 %v2112_v36  ;;  %v1731_v36 = vld [vmem:[#allocation34] ss:$0 sm:$0xff] }
 0x5f5   :  { %1962 = vmatprep.subr.bf16.mxu0 %v2825_v0 }
 0x5f8   :  { %1963 = vmatpush3.bf16.msra.mxu0 %v2113_v37 }
 0x5f9   :  { %1964 = vmatprep.subr.bf16.mxu0 %v2825_v0 }
 0x5fc   :  { %1965 = vmatpush3.bf16.msra.mxu0 %v2114_v38 }
 0x5fd   :  { %1966 = vmatprep.subr.bf16.mxu0 %v2825_v0 }
 0x600   :  { %1967 = vmatpush3.bf16.msra.mxu0 %v2115_v39 }
 0x601   :  { %1968 = vmatprep.subr.bf16.mxu0 %v2825_v0 }
 0x604   :  { %1969 = vmatpush3.bf16.msra.mxu0 %v2116_v40 }
 0x605   :  { %1970 = vmatprep.subr.bf16.mxu0 %v2825_v0 }
 0x608   :  { %1971 = vmatpush3.bf16.msra.mxu0 %v2117_v41 }
 0x609   :  { %1996 = vmatprep.subr.bf16.mxu0 %v2825_v0 }
 0x6be   :  { %v976_v55 = vpop.f32.mrb[8].mxu0 }
 0x6bf   :  { %v977_v56 = vadd.f32 %v1709_v54, %v976_v55  ;;  %v1934_v57 = vpop.f32.mrb[9].mxu0 }
 0x6c0   :  { %v979_v58 = vpop.f32.mrb[10].mxu0 }
 0x6c1   :  { %v980_v59 = vadd.f32 %v1709_v54, %v979_v58  ;;  %v1935_v60 = vpop.f32.mrb[11].mxu0  ;;  %v993_v61 = vmul.f32 %v977_v56, %v977_v56 }
 0x6c3   :  { %v985_v62 = vadd.f32 %v980_v59, %v977_v56  ;;  %v994_v63 = vmul.f32 %v980_v59, %v980_v59 }
 0x6c5   :  { %v986_v1 = vrot.slane %v985_v62, 4  ;;  %v995_v2 = vadd.f32 %v994_v63, %v993_v61 }
 0x6c7   :  { %v987_v3 = vadd.f32 %v986_v1, %v985_v62  ;;  %v996_v4 = vrot.slane %v995_v2, 4 }
 0x6c9   :  { %v988_v5 = vrot.slane %v987_v3, 2  ;;  %v997_v6 = vadd.f32 %v996_v4, %v995_v2 }
 0x6cb   :  { %v989_v7 = vadd.f32 %v988_v5, %v987_v3  ;;  %v998_v8 = vrot.slane %v997_v6, 2 }
 0x6cd   :  { %v990_v9 = vrot.slane %v989_v7, 1  ;;  %v999_v10 = vadd.f32 %v998_v8, %v997_v6 }
 0x6cf   :  { %v991_v11 = vadd.f32 %v990_v9, %v989_v7  ;;  %v1000_v12 = vrot.slane %v999_v10, 1 }
 0x6d1   :  { %v992_v13 = vmul.f32 0.0625, %v991_v11  ;;  %v1001_v14 = vadd.f32 %v1000_v12, %v999_v10 }
 0x6d3   :  { %v1002_v15 = vmul.f32 0.0625, %v1001_v14  ;;  %v1003_v16 = vmul.f32 %v992_v13, %v992_v13  ;;  %v1006_v17 = vsub.f32 %v977_v56, %v992_v13  ;;  %v1007_v18 = vsub.f32 %v980_v59, %v992_v13 }
 0x6d5   :  { %v1004_v19 = vsub.f32 %v1002_v15, %v1003_v16 }
 0x6d7   :  { %v1005_v20 = vmax.f32 %v1004_v19, 0.0 }
 0x6d9   :  { %v1008_v21 = vadd.f32 1e-05, %v1005_v20  ;;  %v1730_v20 = vld [vmem:[#allocation31] ss:$0 sm:$0xff] }
 0x6db   :  { %2144 = vrsqrt.f32 %v1008_v21 }
 0x6e5   :  { %v2145_v22 = vpop.eup %2144 }
 0x6e6   :  { %v1010_v24 = vmul.f32 %v2145_v22, %v1006_v17  ;;  %v1011_v25 = vmul.f32 %v2145_v22, %v1007_v18  ;;  %v1729_v17 = vld [vmem:[#allocation29] ss:$0 sm:$0xff] }
 0x6e8   :  { %v1018_v27 = vmul.f32 %v1718_v23, %v1010_v24  ;;  %v1019_v28 = vmul.f32 %v1718_v23, %v1011_v25 }
 0x6ea   :  { %v1026_v29 = vadd.f32 %v1719_v26, %v1018_v27  ;;  %v1027_v30 = vadd.f32 %v1719_v26, %v1019_v28  ;;  %v2124_v28 = vld [vmem:[#allocation35 + $0x30] sm:$0xff]  }
 0x6ec   :  { %v1028_v31 = vmax.f32 %v1026_v29, 0.0  ;;  %v1029_v32 = vmax.f32 %v1027_v30, 0.0  ;;  %v2125_v29 = vld [vmem:[#allocation35 + $0x38] sm:$0xff]   ;;  %v2126_v30 = vld [vmem:[#allocation38] sm:$0xff]  }
 0x6ee   :  { %v1047_v33 = vpack.c.bf16 %v1029_v32, %v1028_v31  ;;  %v2127_v31 = vld [vmem:[#allocation38 + $0x8] sm:$0xff]   ;;  %v2128_v32 = vld [vmem:[#allocation38 + $0x10] sm:$0xff]  }
 0x6f0   :  { %1953 = vmatmul.mubr.bf16.vlgmr.msra.gmra.mrb[8].mxu1 %v1047_v33  ;;  %v2129_v33 = vld [vmem:[#allocation38 + $0x18] sm:$0xff]  }
 0x6f1   :  { %1992 = vmatprep.mubr.msk.bf16.mxu1 %vm2826_vm0, %v2825_v0  ;;  %1977 = vmatpush3.bf16.msra.mxu1 %v2118_v42 }
 0x6f2   :  { %1978 = vmatprep.subr.bf16.mxu1 %v2825_v0 }
 0x6f5   :  { %1979 = vmatpush3.bf16.msra.mxu1 %v2119_v43 }
 0x6f6   :  { %1980 = vmatprep.subr.bf16.mxu1 %v2825_v0 }
 0x6f9   :  { %1981 = vmatpush3.bf16.msra.mxu1 %v2120_v44  ;;  %v2132_v44 = vld [vmem:[#allocation38 + $0x30] sm:$0xff]  }
 0x6fa   :  { %1982 = vmatprep.subr.bf16.mxu1 %v2825_v0 }
 0x6fd   :  { %1983 = vmatpush3.bf16.msra.mxu1 %v2121_v45  ;;  %v2133_v45 = vld [vmem:[#allocation38 + $0x38] sm:$0xff]  }
 0x6fe   :  { %1984 = vmatprep.subr.bf16.mxu1 %v2825_v0 }
 0x701   :  { %1985 = vmatpush3.bf16.msra.mxu1 %v2122_v46  ;;  %v2134_v46 = vld [vmem:[#allocation41] sm:$0xff]  }
 0x702   :  { %1986 = vmatprep.subr.bf16.mxu1 %v2825_v0 }
 0x705   :  { %1987 = vmatpush3.bf16.msra.mxu1 %v2123_v47  ;;  %v2135_v47 = vld [vmem:[#allocation41 + $0x8] sm:$0xff]  }
 0x706   :  { %1988 = vmatprep.subr.bf16.mxu1 %v2825_v0 }
 0x709   :  { %1989 = vmatpush3.bf16.msra.mxu1 %v2124_v28 }
 0x70a   :  { %1990 = vmatprep.subr.bf16.mxu1 %v2825_v0 }
 0x70d   :  { %1991 = vmatpush3.bf16.msra.mxu1 %v2125_v29 }
 0x70e   :  { %2016 = vmatprep.subr.bf16.mxu1 %v2825_v0 }
 0x7c3   :  { %v1136_v49 = vpop.f32.mrb[8].mxu1 }
 0x7c4   :  { %v1137_v50 = vadd.f32 %v1720_v48, %v1136_v49  ;;  %v1954_v51 = vpop.f32.mrb[9].mxu1  ;;  %v2137_v49 = vld [vmem:[#allocation41 + $0x18] sm:$0xff]  }
 0x7c5   :  { %v1139_v52 = vpop.f32.mrb[10].mxu1  ;;  %v2139_v51 = vld [vmem:[#allocation41 + $0x28] sm:$0xff]  }
 0x7c6   :  { %v1140_v53 = vadd.f32 %v1720_v48, %v1139_v52  ;;  %v1955_v54 = vpop.f32.mrb[11].mxu1  ;;  %v1153_v55 = vmul.f32 %v1137_v50, %v1137_v50  ;;  %v2136_v48 = vld [vmem:[#allocation41 + $0x10] sm:$0xff]   ;;  %v1740_v52 = vld [vmem:[#allocation37] ss:$0 sm:$0xff] }
 0x7c8   :  { %v1145_v56 = vadd.f32 %v1140_v53, %v1137_v50  ;;  %v1154_v57 = vmul.f32 %v1140_v53, %v1140_v53 }
 0x7ca   :  { %v1146_v58 = vrot.slane %v1145_v56, 4  ;;  %v1155_v59 = vadd.f32 %v1154_v57, %v1153_v55 }
 0x7cc   :  { %v1147_v60 = vadd.f32 %v1146_v58, %v1145_v56  ;;  %v1156_v61 = vrot.slane %v1155_v59, 4 }
 0x7ce   :  { %v1148_v62 = vrot.slane %v1147_v60, 2  ;;  %v1157_v63 = vadd.f32 %v1156_v61, %v1155_v59 }
 0x7d0   :  { %v1149_v1 = vadd.f32 %v1148_v62, %v1147_v60  ;;  %v1158_v2 = vrot.slane %v1157_v63, 2  ;;  %v2140_v62 = vld [vmem:[#allocation41 + $0x30] sm:$0xff]  }
 0x7d2   :  { %v1150_v3 = vrot.slane %v1149_v1, 1  ;;  %v1159_v4 = vadd.f32 %v1158_v2, %v1157_v63  ;;  %v2141_v63 = vld [vmem:[#allocation41 + $0x38] sm:$0xff]  }
 0x7d4   :  { %v1151_v5 = vadd.f32 %v1150_v3, %v1149_v1  ;;  %v1160_v6 = vrot.slane %v1159_v4, 1  ;;  %v1749_v1 = vld [vmem:[#allocation40] ss:$0 sm:$0xff] }
 0x7d6   :  { %v1152_v7 = vmul.f32 0.0625, %v1151_v5  ;;  %v1161_v8 = vadd.f32 %v1160_v6, %v1159_v4 }
 0x7d8   :  { %v1162_v9 = vmul.f32 0.0625, %v1161_v8  ;;  %v1163_v10 = vmul.f32 %v1152_v7, %v1152_v7  ;;  %v1166_v11 = vsub.f32 %v1137_v50, %v1152_v7  ;;  %v1167_v12 = vsub.f32 %v1140_v53, %v1152_v7  ;;  %v2138_v50 = vld [vmem:[#allocation41 + $0x20] sm:$0xff]  }
 0x7da   :  { %v1164_v13 = vsub.f32 %v1162_v9, %v1163_v10 }
 0x7dc   :  { %v1165_v14 = vmax.f32 %v1164_v13, 0.0 }
 0x7de   :  { %v1168_v15 = vadd.f32 1e-05, %v1165_v14 }
 0x7e0   :  { %2146 = vrsqrt.f32 %v1168_v15 }
 0x7ea   :  { %v2147_v16 = vpop.eup %2146 }
 0x7eb   :  { %v1170_v18 = vmul.f32 %v2147_v16, %v1166_v11  ;;  %v1171_v19 = vmul.f32 %v2147_v16, %v1167_v12  ;;  %v1758_v11 = vld [vmem:[#allocation43] ss:$0 sm:$0xff] }
 0x7ed   :  { %v1178_v21 = vmul.f32 %v1729_v17, %v1170_v18  ;;  %v1179_v22 = vmul.f32 %v1729_v17, %v1171_v19 }
 0x7ef   :  { %v1186_v23 = vadd.f32 %v1730_v20, %v1178_v21  ;;  %v1187_v24 = vadd.f32 %v1730_v20, %v1179_v22 }
 0x7f1   :  { %v1188_v25 = vmax.f32 %v1186_v23, 0.0  ;;  %v1189_v26 = vmax.f32 %v1187_v24, 0.0 }
 0x7f3   :  { %v1207_v27 = vpack.c.bf16 %v1189_v26, %v1188_v25 }
 0x7f5   :  { %1973 = vmatmul.mubr.bf16.vlgmr.msra.gmra.mrb[12].mxu0 %v1207_v27 }
 0x7f6   :  { %2012 = vmatprep.mubr.msk.bf16.mxu0 %vm2826_vm0, %v2825_v0  ;;  %1997 = vmatpush3.bf16.msra.mxu0 %v2126_v30 }
 0x7f7   :  { %1998 = vmatprep.subr.bf16.mxu0 %v2825_v0 }
 0x7fa   :  { %1999 = vmatpush3.bf16.msra.mxu0 %v2127_v31 }
 0x7fb   :  { %2000 = vmatprep.subr.bf16.mxu0 %v2825_v0 }
 0x7fe   :  { %2001 = vmatpush3.bf16.msra.mxu0 %v2128_v32 }
 0x7ff   :  { %2002 = vmatprep.subr.bf16.mxu0 %v2825_v0 }
 0x802   :  { %2003 = vmatpush3.bf16.msra.mxu0 %v2129_v33 }
 0x803   :  { %2004 = vmatprep.subr.bf16.mxu0 %v2825_v0 }
 0x806   :  { %2005 = vmatpush3.bf16.msra.mxu0 %v2130_v34 }
 0x807   :  { %2006 = vmatprep.subr.bf16.mxu0 %v2825_v0 }
 0x80a   :  { %2007 = vmatpush3.bf16.msra.mxu0 %v2131_v35 }
 0x80b   :  { %2008 = vmatprep.subr.bf16.mxu0 %v2825_v0 }
 0x80e   :  { %2009 = vmatpush3.bf16.msra.mxu0 %v2132_v44 }
 0x80f   :  { %2010 = vmatprep.subr.bf16.mxu0 %v2825_v0 }
 0x812   :  { %2011 = vmatpush3.bf16.msra.mxu0 %v2133_v45 }
 0x8c8   :  { %v1296_v37 = vpop.f32.mrb[12].mxu0 }
 0x8c9   :  { %v1974_v38 = vpop.f32.mrb[13].mxu0  ;;  %v1297_v40 = vadd.f32 %v1731_v36, %v1296_v37 }
 0x8ca   :  { %v1299_v39 = vpop.f32.mrb[14].mxu0 }
 0x8cb   :  { %v1300_v41 = vadd.f32 %v1731_v36, %v1299_v39  ;;  %v1975_v42 = vpop.f32.mrb[15].mxu0 }
 0x8cd   :  { %v1320_v43 = vpack.c.bf16 %v1300_v41, %v1297_v40 }
 0x8cf   :  { %1993 = vmatmul.mubr.bf16.vlgmr.msra.gmra.mrb[12].mxu1 %v1320_v43 }
 0x8d0   :  { %2032 = vmatprep.mubr.msk.bf16.mxu1 %vm2826_vm0, %v2825_v0  ;;  %2017 = vmatpush3.bf16.msra.mxu1 %v2134_v46 }
 0x8d1   :  { %2018 = vmatprep.subr.bf16.mxu1 %v2825_v0 }
 0x8d4   :  { %2019 = vmatpush3.bf16.msra.mxu1 %v2135_v47 }
 0x8d5   :  { %2020 = vmatprep.subr.bf16.mxu1 %v2825_v0 }
 0x8d8   :  { %2021 = vmatpush3.bf16.msra.mxu1 %v2136_v48 }
 0x8d9   :  { %2022 = vmatprep.subr.bf16.mxu1 %v2825_v0 }
 0x8dc   :  { %2023 = vmatpush3.bf16.msra.mxu1 %v2137_v49 }
 0x8dd   :  { %2024 = vmatprep.subr.bf16.mxu1 %v2825_v0 }
 0x8e0   :  { %2025 = vmatpush3.bf16.msra.mxu1 %v2138_v50 }
 0x8e1   :  { %2026 = vmatprep.subr.bf16.mxu1 %v2825_v0 }
 0x8e4   :  { %2027 = vmatpush3.bf16.msra.mxu1 %v2139_v51 }
 0x8e5   :  { %2028 = vmatprep.subr.bf16.mxu1 %v2825_v0 }
 0x8e8   :  { %2029 = vmatpush3.bf16.msra.mxu1 %v2140_v62 }
 0x8e9   :  { %2030 = vmatprep.subr.bf16.mxu1 %v2825_v0 }
 0x8ec   :  { %2031 = vmatpush3.bf16.msra.mxu1 %v2141_v63 }
 0x9a2   :  { %v1409_v53 = vpop.f32.mrb[12].mxu1 }
 0x9a3   :  { %v1410_v54 = vadd.f32 %v1740_v52, %v1409_v53  ;;  %v1994_v55 = vpop.f32.mrb[13].mxu1 }
 0x9a4   :  { %v1412_v56 = vpop.f32.mrb[14].mxu1 }
 0x9a5   :  { %v1413_v57 = vadd.f32 %v1740_v52, %v1412_v56  ;;  %v1995_v58 = vpop.f32.mrb[15].mxu1  ;;  %v1416_v59 = vmax.f32 %v1410_v54, 0.0 }
 0x9a7   :  { %v1417_v60 = vmax.f32 %v1413_v57, 0.0 }
 0x9a9   :  { %v1435_v61 = vpack.c.bf16 %v1417_v60, %v1416_v59 }
 0x9ab   :  { %2013 = vmatmul.mubr.bf16.vlgmr.msra.gmra.mrb[16].mxu0 %v1435_v61 }
 0xa7e   :  { %v1524_v2 = vpop.f32.mrb[16].mxu0 }
 0xa7f   :  { %v1525_v3 = vadd.f32 %v1749_v1, %v1524_v2  ;;  %v2014_v4 = vpop.f32.mrb[17].mxu0 }
 0xa80   :  { %v1527_v5 = vpop.f32.mrb[18].mxu0 }
 0xa81   :  { %v1528_v6 = vadd.f32 %v1749_v1, %v1527_v5  ;;  %v2015_v7 = vpop.f32.mrb[19].mxu0  ;;  %v1531_v8 = vmax.f32 %v1525_v3, 0.0 }
 0xa83   :  { %v1532_v9 = vmax.f32 %v1528_v6, 0.0 }
 0xa85   :  { %v1550_v10 = vpack.c.bf16 %v1532_v9, %v1531_v8 }
 0xa87   :  { %2033 = vmatmul.mubr.bf16.vlgmr.msra.gmra.mrb[16].mxu1 %v1550_v10 }
 0xb5a   :  { %v1639_v12 = vpop.f32.mrb[16].mxu1 }
 0xb5b   :  { %v1640_v13 = vadd.f32 %v1758_v11, %v1639_v12  ;;  %v2034_v14 = vpop.f32.mrb[17].mxu1 }
 0xb5c   :  { %v1642_v0 = vpop.f32.mrb[18].mxu1 }
 0xb5d   :  { %1646 = vst.msk [vmem:[#allocation44] sm:$0xff] %vm430_vm2, %v1640_v13  ;;  %v1643_v15 = vadd.f32 %v1758_v11, %v1642_v0  ;;  %v2035_v16 = vpop.f32.mrb[19].mxu1 }
 0xb5f   :  { %1647 = vst.msk [vmem:[#allocation44 + $0x8] sm:$0xff] %vm430_vm2, %v1643_v15 }
 0xb60   :  { %2753 = shalt.err (!%p2750_p10)
}
 0xb61   :  { %s3554_s10 = sld [smem:[#allocation74_spill]] }
 0xb67   :  { %s2754_s23 = scalar_lea.hbm %s3554_s10, 256 }
 0xb68   :  { %p2755_p11 = scmp.ne.s32.totalorder %s3554_s10, %s2754_s23  ;;  %p2758_p12 = scmp.lt.u32.totalorder %s2754_s23, %s3554_s10 }
 0xb6a   :  { %p2760_p13 = pnand %p2758_p12, %p2755_p11 }
 0xb6c   :  { %2763 = shalt.err (!%p2760_p13)
}
 0xb6d   :  { %1659 = dma.vmem_to_hbm [thread:$0]  %s1654_s16, 256, %s3554_s10, [#allocation4], %s2810_s25, %s2810_s25, %s2811_s4  }
 0xb6e   :  { %2792 = dma.done.wait [#allocation4], 256  }
 0xb6f   :  { %2793 = vsyncadd [#allocation4], 4294967040 }
 0xb70   :  { %1663 = vsyncpa [#allocation3], 1 }
 0xb71   :  { %1664 = vsyncpa [#allocation6], 1 }
 0xb72   :  { %1665 = vsyncpa [#allocation9], 1 }
 0xb73   :  { %1666 = vsyncpa [#allocation12], 1 }
 0xb74   :  { %1667 = vsyncpa [#allocation15], 1 }
 0xb75   :  { %1668 = vsyncpa [#allocation18], 1 }
 0xb76   :  { %1669 = vsyncpa [#allocation21], 1 }
 0xb77   :  { %1670 = vsyncpa [#allocation24], 1 }
 0xb78   :  { %1671 = vsyncpa [#allocation27], 1 }
 0xb79   :  { %1672 = vsyncpa [#allocation30], 1 }
 0xb7a   :  { %1673 = vsyncpa [#allocation33], 1 }
 0xb7b   :  { %1674 = vsyncpa [#allocation36], 1 }
 0xb7c   :  { %1675 = vsyncpa [#allocation39], 1 }
 0xb7d   :  { %1676 = vsyncpa [#allocation42], 1 }
 0xb7e   :  { %1677 = vsyncpa [#allocation4], 1 }

</bundles_post_ra>
